<compile_context>
chip_gen: v7x
topology: tpu7x:2x2x1
jax: 0.10.0
libtpu: 0.0.40
codegen_flags: <defaults>
</compile_context>

<pallas_src>
import functools

import jax
import jax.numpy as jnp
from jax.experimental import pallas as pl
from jax.experimental.pallas import tpu as pltpu


def _tpu_budget():
    """VMEM limit & row tile from physical VMEM (v5e/v6e: 128 MiB, v7x: 64 MiB)."""
    try:
        cap = int(pltpu.get_tpu_info().vmem_capacity_bytes)
    except Exception:  # conservative fallback: assume v7x-sized VMEM
        cap = 64 * 1024 * 1024
    vmem_limit = min(96 * 1024 * 1024, (cap * 3) // 4)  # leave compiler scratch headroom
    row_tile = 512 if cap >= 100 * 1024 * 1024 else 256
    return vmem_limit, row_tile


_VMEM_LIMIT, _ROW_TILE = _tpu_budget()
# TODO(synk): on v7x at DeiT-base scale, mark constant-index-map weight specs with
# pipeline_mode=pl.Buffered(1) to avoid double-buffering resident weights.


def _gelu_tanh(x):
    # tanh-approximate GELU; runs on the EUP slot instead of a VALU erf polynomial.
    return 0.5 * x * (1.0 + jnp.tanh(0.7978845608028654 * (x + 0.044715 * x * x * x)))


def _layernorm(x, g, b, eps):
    mu = jnp.mean(x, axis=-1, keepdims=True)
    var = jnp.mean((x - mu) ** 2, axis=-1, keepdims=True)  # biased, like torch LayerNorm
    return (x - mu) * jax.lax.rsqrt(var + eps) * g + b


# --------------------------------------------------------------------- generic linear
def _linear_kernel(*refs, has_ln, eps):
    it = iter(refs)
    x_ref = next(it)
    g_ref = next(it) if has_ln else None
    be_ref = next(it) if has_ln else None
    w_ref = next(it)
    b_ref = next(it)
    o_ref = next(it)

    if has_ln:
        x = _layernorm(x_ref[...].astype(jnp.float32), g_ref[...], be_ref[...], eps)
        x = x.astype(jnp.bfloat16)
    else:
        x = x_ref[...]
        if x.dtype != jnp.bfloat16:  # no f32 round trip on the no-LN path
            x = x.astype(jnp.bfloat16)
    y = jnp.dot(x, w_ref[...], preferred_element_type=jnp.float32) + b_ref[...]
    o_ref[...] = y.astype(o_ref.dtype)


def fused_linear(x, w, b, *, gamma=None, beta=None, eps=1e-5,
                 out_dtype=jnp.bfloat16, row_tile=None):
    """y = [LN(x)] @ w + b, row-tiled; bf16 MXU matmul, f32 accumulation.

    Weight / bias use constant index maps so they stay VMEM-resident across the
    pipelined row tiles. No host-side padding."""
    M, K = x.shape
    N = w.shape[1]
    has_ln = gamma is not None
    row_tile = row_tile or _ROW_TILE
    tm = M if M <= row_tile else row_tile  # full dim, or 8-aligned row_tile

    in_specs = [pl.BlockSpec((tm, K), lambda i: (i, 0))]
    args = [x]
    if has_ln:
        in_specs += [pl.BlockSpec((1, K), lambda i: (0, 0)),
                     pl.BlockSpec((1, K), lambda i: (0, 0))]
        args += [gamma.reshape(1, K).astype(jnp.float32),
                 beta.reshape(1, K).astype(jnp.float32)]
    in_specs += [pl.BlockSpec((K, N), lambda i: (0, 0)),  # weight: VMEM-resident
                 pl.BlockSpec((1, N), lambda i: (0, 0))]
    args += [w.astype(jnp.bfloat16), b.reshape(1, N).astype(jnp.float32)]

    kern = functools.partial(_linear_kernel, has_ln=has_ln, eps=eps)
    return pl.pallas_call(
        kern,
        grid=(pl.cdiv(M, tm),),
        in_specs=in_specs,
        out_specs=pl.BlockSpec((tm, N), lambda i: (i, 0)),
        out_shape=jax.ShapeDtypeStruct((M, N), out_dtype),
        compiler_params=pltpu.CompilerParams(
            dimension_semantics=("parallel",),
            vmem_limit_bytes=_VMEM_LIMIT),
    )(*args)


# ----------------------------------------------------------------- fused attention block
def _attn_block_kernel(x_ref, g_ref, be_ref, qkvw_ref, qkvb_ref, pw_ref, pb_ref,
                       o_ref, *, num_heads, head_dim, eps):
    C = num_heads * head_dim
    x = x_ref[0].astype(jnp.float32)                                    # (N, C)
    xn = _layernorm(x, g_ref[...], be_ref[...], eps).astype(jnp.bfloat16)
    # qkv linear; attention scale is pre-folded into the q columns of w/b.
    qkv = jnp.dot(xn, qkvw_ref[...], preferred_element_type=jnp.float32) + qkvb_ref[...]
    outs = []
    for h in range(num_heads):                                          # static unroll
        lo = h * head_dim
        hi = lo + head_dim
        q = qkv[:, lo:hi].astype(jnp.bfloat16)
        k = qkv[:, C + lo:C + hi].astype(jnp.bfloat16)
        v = qkv[:, 2 * C + lo:2 * C + hi].astype(jnp.bfloat16)
        s = jax.lax.dot_general(q, k, (((1,), (1,)), ((), ())),
                                preferred_element_type=jnp.float32)     # (N, N)
        s = s - jnp.max(s, axis=-1, keepdims=True)
        p = jnp.exp(s)
        l = jnp.sum(p, axis=-1, keepdims=True)
        oh = jnp.dot(p.astype(jnp.bfloat16), v, preferred_element_type=jnp.float32)
        # normalize AFTER the PV matmul: (N, D) multiply instead of (N, N)
        outs.append(oh * pl.reciprocal(l, approx=True))
    attn = jnp.concatenate(outs, axis=-1).astype(jnp.bfloat16)          # (N, C) head-major
    y = jnp.dot(attn, pw_ref[...], preferred_element_type=jnp.float32) + pb_ref[...] + x
    o_ref[0] = y.astype(o_ref.dtype)


def attn_block(x, blk, *, num_heads, eps=1e-5):
    """Fused LN1 -> QKV -> multi-head SDPA -> proj -> +residual.
    One batch element per grid step; qkv and the attention output stay in VMEM."""
    B, N, C = x.shape
    D = C // num_heads
    const = lambda b: (0, 0)
    kern = functools.partial(_attn_block_kernel, num_heads=num_heads, head_dim=D, eps=eps)
    return pl.pallas_call(
        kern,
        grid=(B,),
        in_specs=[
            pl.BlockSpec((1, N, C), lambda b: (b, 0, 0)),
            pl.BlockSpec((1, C), const), pl.BlockSpec((1, C), const),
            pl.BlockSpec((C, 3 * C), const), pl.BlockSpec((1, 3 * C), const),
            pl.BlockSpec((C, C), const), pl.BlockSpec((1, C), const),
        ],
        out_specs=pl.BlockSpec((1, N, C), lambda b: (b, 0, 0)),
        out_shape=jax.ShapeDtypeStruct((B, N, C), jnp.bfloat16),
        compiler_params=pltpu.CompilerParams(
            dimension_semantics=("parallel",),
            vmem_limit_bytes=_VMEM_LIMIT),
    )(x,
      blk["n1_g"].reshape(1, C).astype(jnp.float32),
      blk["n1_b"].reshape(1, C).astype(jnp.float32),
      blk["qkv_w"].astype(jnp.bfloat16),
      blk["qkv_b"].reshape(1, 3 * C).astype(jnp.float32),
      blk["proj_w"].astype(jnp.bfloat16),
      blk["proj_b"].reshape(1, C).astype(jnp.float32))


# -------------------------------------------------------------------- fused MLP block
def _mlp_block_kernel(x_ref, g_ref, be_ref, w1_ref, b1_ref, w2_ref, b2_ref, o_ref, *, eps):
    x = x_ref[...].astype(jnp.float32)                                  # (tm, C)
    xn = _layernorm(x, g_ref[...], be_ref[...], eps).astype(jnp.bfloat16)
    h = jnp.dot(xn, w1_ref[...], preferred_element_type=jnp.float32) + b1_ref[...]
    h = _gelu_tanh(h).astype(jnp.bfloat16)                              # hidden stays in VMEM
    y = jnp.dot(h, w2_ref[...], preferred_element_type=jnp.float32) + b2_ref[...] + x
    o_ref[...] = y.astype(o_ref.dtype)


def mlp_block(x, blk, *, eps=1e-5, row_tile=None):
    """Fused LN2 -> fc1 -> GELU -> fc2 -> +residual over row tiles."""
    M, C = x.shape
    hidden = blk["fc1_w"].shape[1]
    row_tile = row_tile or _ROW_TILE
    tm = M if M <= row_tile else row_tile
    const = lambda i: (0, 0)
    return pl.pallas_call(
        functools.partial(_mlp_block_kernel, eps=eps),
        grid=(pl.cdiv(M, tm),),
        in_specs=[
            pl.BlockSpec((tm, C), lambda i: (i, 0)),
            pl.BlockSpec((1, C), const), pl.BlockSpec((1, C), const),
            pl.BlockSpec((C, hidden), const), pl.BlockSpec((1, hidden), const),
            pl.BlockSpec((hidden, C), const), pl.BlockSpec((1, C), const),
        ],
        out_specs=pl.BlockSpec((tm, C), lambda i: (i, 0)),
        out_shape=jax.ShapeDtypeStruct((M, C), jnp.bfloat16),
        compiler_params=pltpu.CompilerParams(
            dimension_semantics=("parallel",),
            vmem_limit_bytes=_VMEM_LIMIT),
    )(x,
      blk["n2_g"].reshape(1, C).astype(jnp.float32),
      blk["n2_b"].reshape(1, C).astype(jnp.float32),
      blk["fc1_w"].astype(jnp.bfloat16),
      blk["fc1_b"].reshape(1, hidden).astype(jnp.float32),
      blk["fc2_w"].astype(jnp.bfloat16),
      blk["fc2_b"].reshape(1, C).astype(jnp.float32))


# --------------------------------------------------------------------------- model
def init_params(key, *, embed_dim, depth, num_heads, mlp_ratio, num_classes,
                in_chans, patch_size, num_patches):
    def nrm(k, shape, scale=0.02):
        return (scale * jax.random.normal(k, shape)).astype(jnp.float32)

    def wgt(k, shape):
        return nrm(k, shape).astype(jnp.bfloat16)  # matmul weights live in bf16

    keys = iter(jax.random.split(key, 8 + depth * 8))
    kdim = in_chans * patch_size * patch_size
    hidden = int(embed_dim * mlp_ratio)
    scale = (embed_dim // num_heads) ** (-0.5)
    p = {
        "patch_w": wgt(next(keys), (kdim, embed_dim)),  # conv (E,C,ps,ps) flattened+transposed
        "patch_b": nrm(next(keys), (embed_dim,)),
        # module inits these to zeros; small deterministic randoms keep the test non-trivial
        "cls_token": nrm(next(keys), (1, 1, embed_dim)),
        "pos_embed": nrm(next(keys), (1, num_patches + 1, embed_dim)),
        "norm_g": jnp.ones((embed_dim,), jnp.float32),
        "norm_b": jnp.zeros((embed_dim,), jnp.float32),
        "head_w": wgt(next(keys), (embed_dim, num_classes)),
        "head_b": nrm(next(keys), (num_classes,)),
        "blocks": [],
    }
    for _ in range(depth):
        qkv_w = wgt(next(keys), (embed_dim, 3 * embed_dim))
        qkv_b = nrm(next(keys), (3 * embed_dim,))
        # Fold the 1/sqrt(head_dim) attention scale into the q columns: exactly
        # equivalent to `q @ k.T * scale` in the reference, removes a per-tile mul.
        qkv_w = qkv_w.at[:, :embed_dim].multiply(scale)
        qkv_b = qkv_b.at[:embed_dim].multiply(scale)
        b = {
            "n1_g": jnp.ones((embed_dim,), jnp.float32),
            "n1_b": jnp.zeros((embed_dim,), jnp.float32),
            "qkv_w": qkv_w,
            "qkv_b": qkv_b,
            "proj_w": wgt(next(keys), (embed_dim, embed_dim)),
            "proj_b": nrm(next(keys), (embed_dim,)),
            "n2_g": jnp.ones((embed_dim,), jnp.float32),
            "n2_b": jnp.zeros((embed_dim,), jnp.float32),
            "fc1_w": wgt(next(keys), (embed_dim, hidden)),
            "fc1_b": nrm(next(keys), (hidden,)),
            "fc2_w": wgt(next(keys), (hidden, embed_dim)),
            "fc2_b": nrm(next(keys), (embed_dim,)),
        }
        p["blocks"].append(b)
    return p


def deit_forward(params, x, *, patch_size, num_heads):
    B, Cin, Himg, Wimg = x.shape
    ps = patch_size
    gh, gw = Himg // ps, Wimg // ps
    E = params["patch_w"].shape[1]

    # patch embed: non-overlapping ps x ps patches flattened in (c, kh, kw) order,
    # fed to the MXU in bf16 (all inter-kernel activations are bf16).
    patches = (x.reshape(B, Cin, gh, ps, gw, ps)
                .transpose(0, 2, 4, 1, 3, 5)
                .reshape(B * gh * gw, Cin * ps * ps)).astype(jnp.bfloat16)
    xe = fused_linear(patches, params["patch_w"], params["patch_b"]).reshape(B, gh * gw, E)

    cls = jnp.broadcast_to(params["cls_token"], (B, 1, E)).astype(jnp.bfloat16)
    xs = jnp.concatenate([cls, xe], axis=1) + params["pos_embed"].astype(jnp.bfloat16)
    # pos_drop / attn_drop / proj_drop / mlp drop = identity (rates are 0)

    for blk in params["blocks"]:
        xs = attn_block(xs, blk, num_heads=num_heads)                 # x + attn(LN1(x))
        M = xs.shape[0] * xs.shape[1]
        xs = mlp_block(xs.reshape(M, E), blk).reshape(xs.shape)       # x + mlp(LN2(x))

    # Final LayerNorm is per-row and only the cls row is kept:
    # norm(x)[:, 0] == norm(x[:, 0]) -> fuse norm + classifier head on (B, E).
    feat = xs[:, 0]   # pre_logits = Identity (representation_size=None)
    logits = fused_linear(feat, params["head_w"], params["head_b"],
                          gamma=params["norm_g"], beta=params["norm_b"],
                          out_dtype=jnp.float32)
    return logits


# --------------------------------------------------------------------------- main
if __name__ == "__main__":
    # Small DeiT config: img 16, patch 4 -> 16 patches (+1 cls = seq 17),
    # embed_dim 128, 2 blocks, 4 heads (head_dim 32), mlp hidden 512, 10 classes.
    IMG, PS, CIN = 16, 4, 3
    EMBED, DEPTH, HEADS, MLP_RATIO, NCLS = 128, 2, 4, 4.0, 10
    BATCH = 2
    NUM_PATCHES = (IMG // PS) * (IMG // PS)

    root = jax.random.PRNGKey(0)
    k_param, k_input = jax.random.split(root)

    params = init_params(
        k_param, embed_dim=EMBED, depth=DEPTH, num_heads=HEADS, mlp_ratio=MLP_RATIO,
        num_classes=NCLS, in_chans=CIN, patch_size=PS, num_patches=NUM_PATCHES)

    x = jax.random.normal(k_input, (BATCH, CIN, IMG, IMG), dtype=jnp.float32)

    fwd = jax.jit(functools.partial(deit_forward, patch_size=PS, num_heads=HEADS))
    logits = jax.block_until_ready(fwd(params, x))

    assert logits.shape == (BATCH, NCLS), logits.shape
    assert bool(jnp.all(jnp.isfinite(logits)))
    print("KERNEL_OK")
</pallas_src>

<mosaic_0001>
module attributes {stable_mosaic.version = 11 : i64} {
  func.func @_linear_kernel(%arg0: i32, %arg1: memref<32x48xbf16, #tpu.memory_space<vmem>>, %arg2: memref<48x128xbf16, #tpu.memory_space<vmem>>, %arg3: memref<1x128xf32, #tpu.memory_space<vmem>>, %arg4: memref<32x128xbf16, #tpu.memory_space<vmem>>) attributes {dimension_semantics = [#tpu.dimension_semantics<parallel>], iteration_bounds = array<i64: 1>, scalar_prefetch = 0 : i64, scratch_operands = 0 : i64, tpu.core_type = #tpu.core_type<tc>, window_params = [{transform_indices = @transform_0, window_bounds = array<i64: 32, 48>}, {pipeline_mode = #tpu.pipeline_mode<synchronous>, transform_indices = @transform_1, window_bounds = array<i64: 48, 128>}, {pipeline_mode = #tpu.pipeline_mode<synchronous>, transform_indices = @transform_2, window_bounds = array<i64: 1, 128>}, {transform_indices = @transform_3, window_bounds = array<i64: 32, 128>}]} {
    %c0 = arith.constant 0 : index
    %c0_0 = arith.constant 0 : index
    %0 = vector.load %arg1[%c0, %c0_0] : memref<32x48xbf16, #tpu.memory_space<vmem>>, vector<32x48xbf16>
    %c0_1 = arith.constant 0 : index
    %c0_2 = arith.constant 0 : index
    %1 = vector.load %arg2[%c0_1, %c0_2] : memref<48x128xbf16, #tpu.memory_space<vmem>>, vector<48x128xbf16>
    %cst = arith.constant dense<0.000000e+00> : vector<32x128xf32>
    %2 = tpu.matmul %0, %1, %cst {dimension_numbers = #tpu.dot_dimension_numbers<[1], [0], [0], [1], [0, 0, 1, 1], [], []>} : vector<32x48xbf16>, vector<48x128xbf16>, vector<32x128xf32> -> vector<32x128xf32>
    %c0_3 = arith.constant 0 : index
    %c0_4 = arith.constant 0 : index
    %3 = vector.load %arg3[%c0_3, %c0_4] : memref<1x128xf32, #tpu.memory_space<vmem>>, vector<1x128xf32>
    %4 = vector.broadcast %3 : vector<1x128xf32> to vector<32x128xf32>
    %5 = arith.addf %2, %4 : vector<32x128xf32>
    %6 = arith.truncf %5 : vector<32x128xf32> to vector<32x128xbf16>
    %c0_5 = arith.constant 0 : index
    %c0_6 = arith.constant 0 : index
    %7 = vector.load %arg4[%c0_5, %c0_6] : memref<32x128xbf16, #tpu.memory_space<vmem>>, vector<32x128xbf16>
    tpu.vector_store %arg4[%c0_5, %c0_6], %6 {strides = array<i32>} : memref<32x128xbf16, #tpu.memory_space<vmem>>, vector<32x128xbf16>,
    return
  }
  func.func @transform_0(%arg0: i32) -> (i32, i32) {
    %c0_i32 = arith.constant 0 : i32
    %c0_i32_0 = arith.constant 0 : i32
    return %arg0, %c0_i32 : i32, i32
  }
  func.func @transform_1(%arg0: i32) -> (i32, i32) {
    %c0_i32 = arith.constant 0 : i32
    %c0_i32_0 = arith.constant 0 : i32
    %c0_i32_1 = arith.constant 0 : i32
    return %c0_i32, %c0_i32_0 : i32, i32
  }
  func.func @transform_2(%arg0: i32) -> (i32, i32) {
    %c0_i32 = arith.constant 0 : i32
    %c0_i32_0 = arith.constant 0 : i32
    %c0_i32_1 = arith.constant 0 : i32
    return %c0_i32, %c0_i32_0 : i32, i32
  }
  func.func @transform_3(%arg0: i32) -> (i32, i32) {
    %c0_i32 = arith.constant 0 : i32
    %c0_i32_0 = arith.constant 0 : i32
    return %arg0, %c0_i32 : i32, i32
  }
}

module attributes {stable_mosaic.version = 11 : i64} {
  func.func @_attn_block_kernel(%arg0: i32, %arg1: memref<1x17x128xbf16, #tpu.memory_space<vmem>>, %arg2: memref<1x128xf32, #tpu.memory_space<vmem>>, %arg3: memref<1x128xf32, #tpu.memory_space<vmem>>, %arg4: memref<128x384xbf16, #tpu.memory_space<vmem>>, %arg5: memref<1x384xf32, #tpu.memory_space<vmem>>, %arg6: memref<128x128xbf16, #tpu.memory_space<vmem>>, %arg7: memref<1x128xf32, #tpu.memory_space<vmem>>, %arg8: memref<1x17x128xbf16, #tpu.memory_space<vmem>>) attributes {dimension_semantics = [#tpu.dimension_semantics<parallel>], iteration_bounds = array<i64: 2>, scalar_prefetch = 0 : i64, scratch_operands = 0 : i64, tpu.core_type = #tpu.core_type<tc>, window_params = [{transform_indices = @transform_0, window_bounds = array<i64: 1, 17, 128>}, {pipeline_mode = #tpu.pipeline_mode<synchronous>, transform_indices = @transform_1, window_bounds = array<i64: 1, 128>}, {pipeline_mode = #tpu.pipeline_mode<synchronous>, transform_indices = @transform_2, window_bounds = array<i64: 1, 128>}, {pipeline_mode = #tpu.pipeline_mode<synchronous>, transform_indices = @transform_3, window_bounds = array<i64: 128, 384>}, {pipeline_mode = #tpu.pipeline_mode<synchronous>, transform_indices = @transform_4, window_bounds = array<i64: 1, 384>}, {pipeline_mode = #tpu.pipeline_mode<synchronous>, transform_indices = @transform_5, window_bounds = array<i64: 128, 128>}, {pipeline_mode = #tpu.pipeline_mode<synchronous>, transform_indices = @transform_6, window_bounds = array<i64: 1, 128>}, {transform_indices = @transform_7, window_bounds = array<i64: 1, 17, 128>}]} {
    %c0 = arith.constant 0 : index
    %c0_0 = arith.constant 0 : index
    %c0_1 = arith.constant 0 : index
    %0 = vector.load %arg1[%c0, %c0_0, %c0_1] : memref<1x17x128xbf16, #tpu.memory_space<vmem>>, vector<1x17x128xbf16>
    %1 = vector.shape_cast %0 : vector<1x17x128xbf16> to vector<17x128xbf16>
    %2 = arith.extf %1 : vector<17x128xbf16> to vector<17x128xf32>
    %c0_2 = arith.constant 0 : index
    %c0_3 = arith.constant 0 : index
    %3 = vector.load %arg2[%c0_2, %c0_3] : memref<1x128xf32, #tpu.memory_space<vmem>>, vector<1x128xf32>
    %c0_4 = arith.constant 0 : index
    %c0_5 = arith.constant 0 : index
    %4 = vector.load %arg3[%c0_4, %c0_5] : memref<1x128xf32, #tpu.memory_space<vmem>>, vector<1x128xf32>
    %cst = arith.constant dense<0.000000e+00> : vector<17xf32>
    %5 = vector.multi_reduction <add>, %2, %cst [1] : vector<17x128xf32> to vector<17xf32>
    %6 = vector.shape_cast %5 : vector<17xf32> to vector<17x1xf32>
    %cst_6 = arith.constant 1.280000e+02 : f32
    %7 = vector.broadcast %cst_6 : f32 to vector<17x1xf32>
    %8 = arith.divf %6, %7 : vector<17x1xf32>
    %9 = vector.broadcast %8 : vector<17x1xf32> to vector<17x128xf32>
    %10 = arith.subf %2, %9 : vector<17x128xf32>
    %11 = arith.mulf %10, %10 : vector<17x128xf32>
    %cst_7 = arith.constant dense<0.000000e+00> : vector<17xf32>
    %12 = vector.multi_reduction <add>, %11, %cst_7 [1] : vector<17x128xf32> to vector<17xf32>
    %13 = vector.shape_cast %12 : vector<17xf32> to vector<17x1xf32>
    %cst_8 = arith.constant 1.280000e+02 : f32
    %14 = vector.broadcast %cst_8 : f32 to vector<17x1xf32>
    %15 = arith.divf %13, %14 : vector<17x1xf32>
    %16 = vector.broadcast %8 : vector<17x1xf32> to vector<17x128xf32>
    %17 = arith.subf %2, %16 : vector<17x128xf32>
    %cst_9 = arith.constant 9.99999974E-6 : f32
    %18 = vector.broadcast %cst_9 : f32 to vector<17x1xf32>
    %19 = arith.addf %15, %18 : vector<17x1xf32>
    %20 = math.rsqrt %19 : vector<17x1xf32>
    %21 = vector.broadcast %20 : vector<17x1xf32> to vector<17x128xf32>
    %22 = arith.mulf %17, %21 : vector<17x128xf32>
    %23 = vector.broadcast %3 : vector<1x128xf32> to vector<17x128xf32>
    %24 = arith.mulf %22, %23 : vector<17x128xf32>
    %25 = vector.broadcast %4 : vector<1x128xf32> to vector<17x128xf32>
    %26 = arith.addf %24, %25 : vector<17x128xf32>
    %27 = arith.truncf %26 : vector<17x128xf32> to vector<17x128xbf16>
    %c0_10 = arith.constant 0 : index
    %c0_11 = arith.constant 0 : index
    %28 = vector.load %arg4[%c0_10, %c0_11] : memref<128x384xbf16, #tpu.memory_space<vmem>>, vector<128x384xbf16>
    %cst_12 = arith.constant dense<0.000000e+00> : vector<17x384xf32>
    %29 = tpu.matmul %27, %28, %cst_12 {dimension_numbers = #tpu.dot_dimension_numbers<[1], [0], [0], [1], [0, 0, 1, 1], [], []>} : vector<17x128xbf16>, vector<128x384xbf16>, vector<17x384xf32> -> vector<17x384xf32>
    %c0_13 = arith.constant 0 : index
    %c0_14 = arith.constant 0 : index
    %30 = vector.load %arg5[%c0_13, %c0_14] : memref<1x384xf32, #tpu.memory_space<vmem>>, vector<1x384xf32>
    %31 = vector.broadcast %30 : vector<1x384xf32> to vector<17x384xf32>
    %32 = arith.addf %29, %31 : vector<17x384xf32>
    %33 = vector.extract_strided_slice %32 {offsets = [0, 0], sizes = [17, 32], strides = [1, 1]} : vector<17x384xf32> to vector<17x32xf32>
    %34 = arith.truncf %33 : vector<17x32xf32> to vector<17x32xbf16>
    %35 = vector.extract_strided_slice %32 {offsets = [0, 128], sizes = [17, 32], strides = [1, 1]} : vector<17x384xf32> to vector<17x32xf32>
    %36 = arith.truncf %35 : vector<17x32xf32> to vector<17x32xbf16>
    %37 = vector.extract_strided_slice %32 {offsets = [0, 256], sizes = [17, 32], strides = [1, 1]} : vector<17x384xf32> to vector<17x32xf32>
    %38 = arith.truncf %37 : vector<17x32xf32> to vector<17x32xbf16>
    %cst_15 = arith.constant dense<0.000000e+00> : vector<17x17xf32>
    %39 = tpu.matmul %34, %36, %cst_15 {dimension_numbers = #tpu.dot_dimension_numbers<[1], [1], [0], [0], [0, 0, 1, 0], [], []>} : vector<17x32xbf16>, vector<17x32xbf16>, vector<17x17xf32> -> vector<17x17xf32>
    %cst_16 = arith.constant dense<0xFF800000> : vector<17xf32>
    %40 = vector.multi_reduction <maximumf>, %39, %cst_16 [1] : vector<17x17xf32> to vector<17xf32>
    %41 = vector.shape_cast %40 : vector<17xf32> to vector<17x1xf32>
    %42 = vector.broadcast %41 : vector<17x1xf32> to vector<17x17xf32>
    %43 = arith.subf %39, %42 : vector<17x17xf32>
    %44 = math.exp %43 : vector<17x17xf32>
    %cst_17 = arith.constant dense<0.000000e+00> : vector<17xf32>
    %45 = vector.multi_reduction <add>, %44, %cst_17 [1] : vector<17x17xf32> to vector<17xf32>
    %46 = vector.shape_cast %45 : vector<17xf32> to vector<17x1xf32>
    %47 = arith.truncf %44 : vector<17x17xf32> to vector<17x17xbf16>
    %cst_18 = arith.constant dense<0.000000e+00> : vector<17x32xf32>
    %48 = tpu.matmul %47, %38, %cst_18 {dimension_numbers = #tpu.dot_dimension_numbers<[1], [0], [0], [1], [0, 0, 1, 1], [], []>} : vector<17x17xbf16>, vector<17x32xbf16>, vector<17x32xf32> -> vector<17x32xf32>
    %49 = tpu.reciprocal %46 {approx = true} : vector<17x1xf32> -> vector<17x1xf32>
    %50 = vector.broadcast %49 : vector<17x1xf32> to vector<17x32xf32>
    %51 = arith.mulf %48, %50 : vector<17x32xf32>
    %52 = vector.extract_strided_slice %32 {offsets = [0, 32], sizes = [17, 32], strides = [1, 1]} : vector<17x384xf32> to vector<17x32xf32>
    %53 = arith.truncf %52 : vector<17x32xf32> to vector<17x32xbf16>
    %54 = vector.extract_strided_slice %32 {offsets = [0, 160], sizes = [17, 32], strides = [1, 1]} : vector<17x384xf32> to vector<17x32xf32>
    %55 = arith.truncf %54 : vector<17x32xf32> to vector<17x32xbf16>
    %56 = vector.extract_strided_slice %32 {offsets = [0, 288], sizes = [17, 32], strides = [1, 1]} : vector<17x384xf32> to vector<17x32xf32>
    %57 = arith.truncf %56 : vector<17x32xf32> to vector<17x32xbf16>
    %cst_19 = arith.constant dense<0.000000e+00> : vector<17x17xf32>
    %58 = tpu.matmul %53, %55, %cst_19 {dimension_numbers = #tpu.dot_dimension_numbers<[1], [1], [0], [0], [0, 0, 1, 0], [], []>} : vector<17x32xbf16>, vector<17x32xbf16>, vector<17x17xf32> -> vector<17x17xf32>
    %cst_20 = arith.constant dense<0xFF800000> : vector<17xf32>
    %59 = vector.multi_reduction <maximumf>, %58, %cst_20 [1] : vector<17x17xf32> to vector<17xf32>
    %60 = vector.shape_cast %59 : vector<17xf32> to vector<17x1xf32>
    %61 = vector.broadcast %60 : vector<17x1xf32> to vector<17x17xf32>
    %62 = arith.subf %58, %61 : vector<17x17xf32>
    %63 = math.exp %62 : vector<17x17xf32>
    %cst_21 = arith.constant dense<0.000000e+00> : vector<17xf32>
    %64 = vector.multi_reduction <add>, %63, %cst_21 [1] : vector<17x17xf32> to vector<17xf32>
    %65 = vector.shape_cast %64 : vector<17xf32> to vector<17x1xf32>
    %66 = arith.truncf %63 : vector<17x17xf32> to vector<17x17xbf16>
    %cst_22 = arith.constant dense<0.000000e+00> : vector<17x32xf32>
    %67 = tpu.matmul %66, %57, %cst_22 {dimension_numbers = #tpu.dot_dimension_numbers<[1], [0], [0], [1], [0, 0, 1, 1], [], []>} : vector<17x17xbf16>, vector<17x32xbf16>, vector<17x32xf32> -> vector<17x32xf32>
    %68 = tpu.reciprocal %65 {approx = true} : vector<17x1xf32> -> vector<17x1xf32>
    %69 = vector.broadcast %68 : vector<17x1xf32> to vector<17x32xf32>
    %70 = arith.mulf %67, %69 : vector<17x32xf32>
    %71 = vector.extract_strided_slice %32 {offsets = [0, 64], sizes = [17, 32], strides = [1, 1]} : vector<17x384xf32> to vector<17x32xf32>
    %72 = arith.truncf %71 : vector<17x32xf32> to vector<17x32xbf16>
    %73 = vector.extract_strided_slice %32 {offsets = [0, 192], sizes = [17, 32], strides = [1, 1]} : vector<17x384xf32> to vector<17x32xf32>
    %74 = arith.truncf %73 : vector<17x32xf32> to vector<17x32xbf16>
    %75 = vector.extract_strided_slice %32 {offsets = [0, 320], sizes = [17, 32], strides = [1, 1]} : vector<17x384xf32> to vector<17x32xf32>
    %76 = arith.truncf %75 : vector<17x32xf32> to vector<17x32xbf16>
    %cst_23 = arith.constant dense<0.000000e+00> : vector<17x17xf32>
    %77 = tpu.matmul %72, %74, %cst_23 {dimension_numbers = #tpu.dot_dimension_numbers<[1], [1], [0], [0], [0, 0, 1, 0], [], []>} : vector<17x32xbf16>, vector<17x32xbf16>, vector<17x17xf32> -> vector<17x17xf32>
    %cst_24 = arith.constant dense<0xFF800000> : vector<17xf32>
    %78 = vector.multi_reduction <maximumf>, %77, %cst_24 [1] : vector<17x17xf32> to vector<17xf32>
    %79 = vector.shape_cast %78 : vector<17xf32> to vector<17x1xf32>
    %80 = vector.broadcast %79 : vector<17x1xf32> to vector<17x17xf32>
    %81 = arith.subf %77, %80 : vector<17x17xf32>
    %82 = math.exp %81 : vector<17x17xf32>
    %cst_25 = arith.constant dense<0.000000e+00> : vector<17xf32>
    %83 = vector.multi_reduction <add>, %82, %cst_25 [1] : vector<17x17xf32> to vector<17xf32>
    %84 = vector.shape_cast %83 : vector<17xf32> to vector<17x1xf32>
    %85 = arith.truncf %82 : vector<17x17xf32> to vector<17x17xbf16>
    %cst_26 = arith.constant dense<0.000000e+00> : vector<17x32xf32>
    %86 = tpu.matmul %85, %76, %cst_26 {dimension_numbers = #tpu.dot_dimension_numbers<[1], [0], [0], [1], [0, 0, 1, 1], [], []>} : vector<17x17xbf16>, vector<17x32xbf16>, vector<17x32xf32> -> vector<17x32xf32>
    %87 = tpu.reciprocal %84 {approx = true} : vector<17x1xf32> -> vector<17x1xf32>
    %88 = vector.broadcast %87 : vector<17x1xf32> to vector<17x32xf32>
    %89 = arith.mulf %86, %88 : vector<17x32xf32>
    %90 = vector.extract_strided_slice %32 {offsets = [0, 96], sizes = [17, 32], strides = [1, 1]} : vector<17x384xf32> to vector<17x32xf32>
    %91 = arith.truncf %90 : vector<17x32xf32> to vector<17x32xbf16>
    %92 = vector.extract_strided_slice %32 {offsets = [0, 224], sizes = [17, 32], strides = [1, 1]} : vector<17x384xf32> to vector<17x32xf32>
    %93 = arith.truncf %92 : vector<17x32xf32> to vector<17x32xbf16>
    %94 = vector.extract_strided_slice %32 {offsets = [0, 352], sizes = [17, 32], strides = [1, 1]} : vector<17x384xf32> to vector<17x32xf32>
    %95 = arith.truncf %94 : vector<17x32xf32> to vector<17x32xbf16>
    %cst_27 = arith.constant dense<0.000000e+00> : vector<17x17xf32>
    %96 = tpu.matmul %91, %93, %cst_27 {dimension_numbers = #tpu.dot_dimension_numbers<[1], [1], [0], [0], [0, 0, 1, 0], [], []>} : vector<17x32xbf16>, vector<17x32xbf16>, vector<17x17xf32> -> vector<17x17xf32>
    %cst_28 = arith.constant dense<0xFF800000> : vector<17xf32>
    %97 = vector.multi_reduction <maximumf>, %96, %cst_28 [1] : vector<17x17xf32> to vector<17xf32>
    %98 = vector.shape_cast %97 : vector<17xf32> to vector<17x1xf32>
    %99 = vector.broadcast %98 : vector<17x1xf32> to vector<17x17xf32>
    %100 = arith.subf %96, %99 : vector<17x17xf32>
    %101 = math.exp %100 : vector<17x17xf32>
    %cst_29 = arith.constant dense<0.000000e+00> : vector<17xf32>
    %102 = vector.multi_reduction <add>, %101, %cst_29 [1] : vector<17x17xf32> to vector<17xf32>
    %103 = vector.shape_cast %102 : vector<17xf32> to vector<17x1xf32>
    %104 = arith.truncf %101 : vector<17x17xf32> to vector<17x17xbf16>
    %cst_30 = arith.constant dense<0.000000e+00> : vector<17x32xf32>
    %105 = tpu.matmul %104, %95, %cst_30 {dimension_numbers = #tpu.dot_dimension_numbers<[1], [0], [0], [1], [0, 0, 1, 1], [], []>} : vector<17x17xbf16>, vector<17x32xbf16>, vector<17x32xf32> -> vector<17x32xf32>
    %106 = tpu.reciprocal %103 {approx = true} : vector<17x1xf32> -> vector<17x1xf32>
    %107 = vector.broadcast %106 : vector<17x1xf32> to vector<17x32xf32>
    %108 = arith.mulf %105, %107 : vector<17x32xf32>
    %109 = tpu.concatenate %51, %70, %89, %108 in 1 : vector<17x32xf32>, vector<17x32xf32>, vector<17x32xf32>, vector<17x32xf32> -> vector<17x128xf32>
    %110 = arith.truncf %109 : vector<17x128xf32> to vector<17x128xbf16>
    %c0_31 = arith.constant 0 : index
    %c0_32 = arith.constant 0 : index
    %111 = vector.load %arg6[%c0_31, %c0_32] : memref<128x128xbf16, #tpu.memory_space<vmem>>, vector<128x128xbf16>
    %cst_33 = arith.constant dense<0.000000e+00> : vector<17x128xf32>
    %112 = tpu.matmul %110, %111, %cst_33 {dimension_numbers = #tpu.dot_dimension_numbers<[1], [0], [0], [1], [0, 0, 1, 1], [], []>} : vector<17x128xbf16>, vector<128x128xbf16>, vector<17x128xf32> -> vector<17x128xf32>
    %c0_34 = arith.constant 0 : index
    %c0_35 = arith.constant 0 : index
    %113 = vector.load %arg7[%c0_34, %c0_35] : memref<1x128xf32, #tpu.memory_space<vmem>>, vector<1x128xf32>
    %114 = vector.broadcast %113 : vector<1x128xf32> to vector<17x128xf32>
    %115 = arith.addf %112, %114 : vector<17x128xf32>
    %116 = arith.addf %115, %2 : vector<17x128xf32>
    %117 = arith.truncf %116 : vector<17x128xf32> to vector<17x128xbf16>
    %c0_36 = arith.constant 0 : index
    %c0_37 = arith.constant 0 : index
    %c0_38 = arith.constant 0 : index
    %118 = vector.load %arg8[%c0_36, %c0_37, %c0_38] : memref<1x17x128xbf16, #tpu.memory_space<vmem>>, vector<1x17x128xbf16>
    %119 = vector.shape_cast %118 : vector<1x17x128xbf16> to vector<17x128xbf16>
    %120 = vector.shape_cast %117 : vector<17x128xbf16> to vector<1x17x128xbf16>
    tpu.vector_store %arg8[%c0_36, %c0_37, %c0_38], %120 {strides = array<i32>} : memref<1x17x128xbf16, #tpu.memory_space<vmem>>, vector<1x17x128xbf16>,
    return
  }
  func.func @transform_0(%arg0: i32) -> (i32, i32, i32) {
    %c0_i32 = arith.constant 0 : i32
    %c0_i32_0 = arith.constant 0 : i32
    %c0_i32_1 = arith.constant 0 : i32
    return %arg0, %c0_i32, %c0_i32_0 : i32, i32, i32
  }
  func.func @transform_1(%arg0: i32) -> (i32, i32) {
    %c0_i32 = arith.constant 0 : i32
    %c0_i32_0 = arith.constant 0 : i32
    %c0_i32_1 = arith.constant 0 : i32
    return %c0_i32, %c0_i32_0 : i32, i32
  }
  func.func @transform_2(%arg0: i32) -> (i32, i32) {
    %c0_i32 = arith.constant 0 : i32
    %c0_i32_0 = arith.constant 0 : i32
    %c0_i32_1 = arith.constant 0 : i32
    return %c0_i32, %c0_i32_0 : i32, i32
  }
  func.func @transform_3(%arg0: i32) -> (i32, i32) {
    %c0_i32 = arith.constant 0 : i32
    %c0_i32_0 = arith.constant 0 : i32
    %c0_i32_1 = arith.constant 0 : i32
    return %c0_i32, %c0_i32_0 : i32, i32
  }
  func.func @transform_4(%arg0: i32) -> (i32, i32) {
    %c0_i32 = arith.constant 0 : i32
    %c0_i32_0 = arith.constant 0 : i32
    %c0_i32_1 = arith.constant 0 : i32
    return %c0_i32, %c0_i32_0 : i32, i32
  }
  func.func @transform_5(%arg0: i32) -> (i32, i32) {
    %c0_i32 = arith.constant 0 : i32
    %c0_i32_0 = arith.constant 0 : i32
    %c0_i32_1 = arith.constant 0 : i32
    return %c0_i32, %c0_i32_0 : i32, i32
  }
  func.func @transform_6(%arg0: i32) -> (i32, i32) {
    %c0_i32 = arith.constant 0 : i32
    %c0_i32_0 = arith.constant 0 : i32
    %c0_i32_1 = arith.constant 0 : i32
    return %c0_i32, %c0_i32_0 : i32, i32
  }
  func.func @transform_7(%arg0: i32) -> (i32, i32, i32) {
    %c0_i32 = arith.constant 0 : i32
    %c0_i32_0 = arith.constant 0 : i32
    %c0_i32_1 = arith.constant 0 : i32
    return %arg0, %c0_i32, %c0_i32_0 : i32, i32, i32
  }
}

module attributes {stable_mosaic.version = 11 : i64} {
  func.func @_mlp_block_kernel(%arg0: i32, %arg1: memref<34x128xbf16, #tpu.memory_space<vmem>>, %arg2: memref<1x128xf32, #tpu.memory_space<vmem>>, %arg3: memref<1x128xf32, #tpu.memory_space<vmem>>, %arg4: memref<128x512xbf16, #tpu.memory_space<vmem>>, %arg5: memref<1x512xf32, #tpu.memory_space<vmem>>, %arg6: memref<512x128xbf16, #tpu.memory_space<vmem>>, %arg7: memref<1x128xf32, #tpu.memory_space<vmem>>, %arg8: memref<34x128xbf16, #tpu.memory_space<vmem>>) attributes {dimension_semantics = [#tpu.dimension_semantics<parallel>], iteration_bounds = array<i64: 1>, scalar_prefetch = 0 : i64, scratch_operands = 0 : i64, tpu.core_type = #tpu.core_type<tc>, window_params = [{transform_indices = @transform_0, window_bounds = array<i64: 34, 128>}, {pipeline_mode = #tpu.pipeline_mode<synchronous>, transform_indices = @transform_1, window_bounds = array<i64: 1, 128>}, {pipeline_mode = #tpu.pipeline_mode<synchronous>, transform_indices = @transform_2, window_bounds = array<i64: 1, 128>}, {pipeline_mode = #tpu.pipeline_mode<synchronous>, transform_indices = @transform_3, window_bounds = array<i64: 128, 512>}, {pipeline_mode = #tpu.pipeline_mode<synchronous>, transform_indices = @transform_4, window_bounds = array<i64: 1, 512>}, {pipeline_mode = #tpu.pipeline_mode<synchronous>, transform_indices = @transform_5, window_bounds = array<i64: 512, 128>}, {pipeline_mode = #tpu.pipeline_mode<synchronous>, transform_indices = @transform_6, window_bounds = array<i64: 1, 128>}, {transform_indices = @transform_7, window_bounds = array<i64: 34, 128>}]} {
    %c0 = arith.constant 0 : index
    %c0_0 = arith.constant 0 : index
    %0 = vector.load %arg1[%c0, %c0_0] : memref<34x128xbf16, #tpu.memory_space<vmem>>, vector<34x128xbf16>
    %1 = arith.extf %0 : vector<34x128xbf16> to vector<34x128xf32>
    %c0_1 = arith.constant 0 : index
    %c0_2 = arith.constant 0 : index
    %2 = vector.load %arg2[%c0_1, %c0_2] : memref<1x128xf32, #tpu.memory_space<vmem>>, vector<1x128xf32>
    %c0_3 = arith.constant 0 : index
    %c0_4 = arith.constant 0 : index
    %3 = vector.load %arg3[%c0_3, %c0_4] : memref<1x128xf32, #tpu.memory_space<vmem>>, vector<1x128xf32>
    %cst = arith.constant dense<0.000000e+00> : vector<34xf32>
    %4 = vector.multi_reduction <add>, %1, %cst [1] : vector<34x128xf32> to vector<34xf32>
    %5 = vector.shape_cast %4 : vector<34xf32> to vector<34x1xf32>
    %cst_5 = arith.constant 1.280000e+02 : f32
    %6 = vector.broadcast %cst_5 : f32 to vector<34x1xf32>
    %7 = arith.divf %5, %6 : vector<34x1xf32>
    %8 = vector.broadcast %7 : vector<34x1xf32> to vector<34x128xf32>
    %9 = arith.subf %1, %8 : vector<34x128xf32>
    %10 = arith.mulf %9, %9 : vector<34x128xf32>
    %cst_6 = arith.constant dense<0.000000e+00> : vector<34xf32>
    %11 = vector.multi_reduction <add>, %10, %cst_6 [1] : vector<34x128xf32> to vector<34xf32>
    %12 = vector.shape_cast %11 : vector<34xf32> to vector<34x1xf32>
    %cst_7 = arith.constant 1.280000e+02 : f32
    %13 = vector.broadcast %cst_7 : f32 to vector<34x1xf32>
    %14 = arith.divf %12, %13 : vector<34x1xf32>
    %15 = vector.broadcast %7 : vector<34x1xf32> to vector<34x128xf32>
    %16 = arith.subf %1, %15 : vector<34x128xf32>
    %cst_8 = arith.constant 9.99999974E-6 : f32
    %17 = vector.broadcast %cst_8 : f32 to vector<34x1xf32>
    %18 = arith.addf %14, %17 : vector<34x1xf32>
    %19 = math.rsqrt %18 : vector<34x1xf32>
    %20 = vector.broadcast %19 : vector<34x1xf32> to vector<34x128xf32>
    %21 = arith.mulf %16, %20 : vector<34x128xf32>
    %22 = vector.broadcast %2 : vector<1x128xf32> to vector<34x128xf32>
    %23 = arith.mulf %21, %22 : vector<34x128xf32>
    %24 = vector.broadcast %3 : vector<1x128xf32> to vector<34x128xf32>
    %25 = arith.addf %23, %24 : vector<34x128xf32>
    %26 = arith.truncf %25 : vector<34x128xf32> to vector<34x128xbf16>
    %c0_9 = arith.constant 0 : index
    %c0_10 = arith.constant 0 : index
    %27 = vector.load %arg4[%c0_9, %c0_10] : memref<128x512xbf16, #tpu.memory_space<vmem>>, vector<128x512xbf16>
    %cst_11 = arith.constant dense<0.000000e+00> : vector<34x512xf32>
    %28 = tpu.matmul %26, %27, %cst_11 {dimension_numbers = #tpu.dot_dimension_numbers<[1], [0], [0], [1], [0, 0, 1, 1], [], []>} : vector<34x128xbf16>, vector<128x512xbf16>, vector<34x512xf32> -> vector<34x512xf32>
    %c0_12 = arith.constant 0 : index
    %c0_13 = arith.constant 0 : index
    %29 = vector.load %arg5[%c0_12, %c0_13] : memref<1x512xf32, #tpu.memory_space<vmem>>, vector<1x512xf32>
    %30 = vector.broadcast %29 : vector<1x512xf32> to vector<34x512xf32>
    %31 = arith.addf %28, %30 : vector<34x512xf32>
    %cst_14 = arith.constant 5.000000e-01 : f32
    %32 = vector.broadcast %cst_14 : f32 to vector<34x512xf32>
    %33 = arith.mulf %32, %31 : vector<34x512xf32>
    %cst_15 = arith.constant 4.471500e-02 : f32
    %34 = vector.broadcast %cst_15 : f32 to vector<34x512xf32>
    %35 = arith.mulf %34, %31 : vector<34x512xf32>
    %36 = arith.mulf %35, %31 : vector<34x512xf32>
    %37 = arith.mulf %36, %31 : vector<34x512xf32>
    %38 = arith.addf %31, %37 : vector<34x512xf32>
    %cst_16 = arith.constant 0.797884583 : f32
    %39 = vector.broadcast %cst_16 : f32 to vector<34x512xf32>
    %40 = arith.mulf %39, %38 : vector<34x512xf32>
    %41 = math.tanh %40 : vector<34x512xf32>
    %cst_17 = arith.constant 1.000000e+00 : f32
    %42 = vector.broadcast %cst_17 : f32 to vector<34x512xf32>
    %43 = arith.addf %42, %41 : vector<34x512xf32>
    %44 = arith.mulf %33, %43 : vector<34x512xf32>
    %45 = arith.truncf %44 : vector<34x512xf32> to vector<34x512xbf16>
    %c0_18 = arith.constant 0 : index
    %c0_19 = arith.constant 0 : index
    %46 = vector.load %arg6[%c0_18, %c0_19] : memref<512x128xbf16, #tpu.memory_space<vmem>>, vector<512x128xbf16>
    %cst_20 = arith.constant dense<0.000000e+00> : vector<34x128xf32>
    %47 = tpu.matmul %45, %46, %cst_20 {dimension_numbers = #tpu.dot_dimension_numbers<[1], [0], [0], [1], [0, 0, 1, 1], [], []>} : vector<34x512xbf16>, vector<512x128xbf16>, vector<34x128xf32> -> vector<34x128xf32>
    %c0_21 = arith.constant 0 : index
    %c0_22 = arith.constant 0 : index
    %48 = vector.load %arg7[%c0_21, %c0_22] : memref<1x128xf32, #tpu.memory_space<vmem>>, vector<1x128xf32>
    %49 = vector.broadcast %48 : vector<1x128xf32> to vector<34x128xf32>
    %50 = arith.addf %47, %49 : vector<34x128xf32>
    %51 = arith.addf %50, %1 : vector<34x128xf32>
    %52 = arith.truncf %51 : vector<34x128xf32> to vector<34x128xbf16>
    %c0_23 = arith.constant 0 : index
    %c0_24 = arith.constant 0 : index
    %53 = vector.load %arg8[%c0_23, %c0_24] : memref<34x128xbf16, #tpu.memory_space<vmem>>, vector<34x128xbf16>
    tpu.vector_store %arg8[%c0_23, %c0_24], %52 {strides = array<i32>} : memref<34x128xbf16, #tpu.memory_space<vmem>>, vector<34x128xbf16>,
    return
  }
  func.func @transform_0(%arg0: i32) -> (i32, i32) {
    %c0_i32 = arith.constant 0 : i32
    %c0_i32_0 = arith.constant 0 : i32
    return %arg0, %c0_i32 : i32, i32
  }
  func.func @transform_1(%arg0: i32) -> (i32, i32) {
    %c0_i32 = arith.constant 0 : i32
    %c0_i32_0 = arith.constant 0 : i32
    %c0_i32_1 = arith.constant 0 : i32
    return %c0_i32, %c0_i32_0 : i32, i32
  }
  func.func @transform_2(%arg0: i32) -> (i32, i32) {
    %c0_i32 = arith.constant 0 : i32
    %c0_i32_0 = arith.constant 0 : i32
    %c0_i32_1 = arith.constant 0 : i32
    return %c0_i32, %c0_i32_0 : i32, i32
  }
  func.func @transform_3(%arg0: i32) -> (i32, i32) {
    %c0_i32 = arith.constant 0 : i32
    %c0_i32_0 = arith.constant 0 : i32
    %c0_i32_1 = arith.constant 0 : i32
    return %c0_i32, %c0_i32_0 : i32, i32
  }
  func.func @transform_4(%arg0: i32) -> (i32, i32) {
    %c0_i32 = arith.constant 0 : i32
    %c0_i32_0 = arith.constant 0 : i32
    %c0_i32_1 = arith.constant 0 : i32
    return %c0_i32, %c0_i32_0 : i32, i32
  }
  func.func @transform_5(%arg0: i32) -> (i32, i32) {
    %c0_i32 = arith.constant 0 : i32
    %c0_i32_0 = arith.constant 0 : i32
    %c0_i32_1 = arith.constant 0 : i32
    return %c0_i32, %c0_i32_0 : i32, i32
  }
  func.func @transform_6(%arg0: i32) -> (i32, i32) {
    %c0_i32 = arith.constant 0 : i32
    %c0_i32_0 = arith.constant 0 : i32
    %c0_i32_1 = arith.constant 0 : i32
    return %c0_i32, %c0_i32_0 : i32, i32
  }
  func.func @transform_7(%arg0: i32) -> (i32, i32) {
    %c0_i32 = arith.constant 0 : i32
    %c0_i32_0 = arith.constant 0 : i32
    return %arg0, %c0_i32 : i32, i32
  }
}

module attributes {stable_mosaic.version = 11 : i64} {
  func.func @_linear_kernel(%arg0: i32, %arg1: memref<2x128xbf16, #tpu.memory_space<vmem>>, %arg2: memref<1x128xf32, #tpu.memory_space<vmem>>, %arg3: memref<1x128xf32, #tpu.memory_space<vmem>>, %arg4: memref<128x10xbf16, #tpu.memory_space<vmem>>, %arg5: memref<1x10xf32, #tpu.memory_space<vmem>>, %arg6: memref<2x10xf32, #tpu.memory_space<vmem>>) attributes {dimension_semantics = [#tpu.dimension_semantics<parallel>], iteration_bounds = array<i64: 1>, scalar_prefetch = 0 : i64, scratch_operands = 0 : i64, tpu.core_type = #tpu.core_type<tc>, window_params = [{transform_indices = @transform_0, window_bounds = array<i64: 2, 128>}, {pipeline_mode = #tpu.pipeline_mode<synchronous>, transform_indices = @transform_1, window_bounds = array<i64: 1, 128>}, {pipeline_mode = #tpu.pipeline_mode<synchronous>, transform_indices = @transform_2, window_bounds = array<i64: 1, 128>}, {pipeline_mode = #tpu.pipeline_mode<synchronous>, transform_indices = @transform_3, window_bounds = array<i64: 128, 10>}, {pipeline_mode = #tpu.pipeline_mode<synchronous>, transform_indices = @transform_4, window_bounds = array<i64: 1, 10>}, {transform_indices = @transform_5, window_bounds = array<i64: 2, 10>}]} {
    %c0 = arith.constant 0 : index
    %c0_0 = arith.constant 0 : index
    %0 = vector.load %arg1[%c0, %c0_0] : memref<2x128xbf16, #tpu.memory_space<vmem>>, vector<2x128xbf16>
    %1 = arith.extf %0 : vector<2x128xbf16> to vector<2x128xf32>
    %c0_1 = arith.constant 0 : index
    %c0_2 = arith.constant 0 : index
    %2 = vector.load %arg2[%c0_1, %c0_2] : memref<1x128xf32, #tpu.memory_space<vmem>>, vector<1x128xf32>
    %c0_3 = arith.constant 0 : index
    %c0_4 = arith.constant 0 : index
    %3 = vector.load %arg3[%c0_3, %c0_4] : memref<1x128xf32, #tpu.memory_space<vmem>>, vector<1x128xf32>
    %cst = arith.constant dense<0.000000e+00> : vector<2xf32>
    %4 = vector.multi_reduction <add>, %1, %cst [1] : vector<2x128xf32> to vector<2xf32>
    %5 = vector.shape_cast %4 : vector<2xf32> to vector<2x1xf32>
    %cst_5 = arith.constant 1.280000e+02 : f32
    %6 = vector.broadcast %cst_5 : f32 to vector<2x1xf32>
    %7 = arith.divf %5, %6 : vector<2x1xf32>
    %8 = vector.broadcast %7 : vector<2x1xf32> to vector<2x128xf32>
    %9 = arith.subf %1, %8 : vector<2x128xf32>
    %10 = arith.mulf %9, %9 : vector<2x128xf32>
    %cst_6 = arith.constant dense<0.000000e+00> : vector<2xf32>
    %11 = vector.multi_reduction <add>, %10, %cst_6 [1] : vector<2x128xf32> to vector<2xf32>
    %12 = vector.shape_cast %11 : vector<2xf32> to vector<2x1xf32>
    %cst_7 = arith.constant 1.280000e+02 : f32
    %13 = vector.broadcast %cst_7 : f32 to vector<2x1xf32>
    %14 = arith.divf %12, %13 : vector<2x1xf32>
    %15 = vector.broadcast %7 : vector<2x1xf32> to vector<2x128xf32>
    %16 = arith.subf %1, %15 : vector<2x128xf32>
    %cst_8 = arith.constant 9.99999974E-6 : f32
    %17 = vector.broadcast %cst_8 : f32 to vector<2x1xf32>
    %18 = arith.addf %14, %17 : vector<2x1xf32>
    %19 = math.rsqrt %18 : vector<2x1xf32>
    %20 = vector.broadcast %19 : vector<2x1xf32> to vector<2x128xf32>
    %21 = arith.mulf %16, %20 : vector<2x128xf32>
    %22 = vector.broadcast %2 : vector<1x128xf32> to vector<2x128xf32>
    %23 = arith.mulf %21, %22 : vector<2x128xf32>
    %24 = vector.broadcast %3 : vector<1x128xf32> to vector<2x128xf32>
    %25 = arith.addf %23, %24 : vector<2x128xf32>
    %26 = arith.truncf %25 : vector<2x128xf32> to vector<2x128xbf16>
    %c0_9 = arith.constant 0 : index
    %c0_10 = arith.constant 0 : index
    %27 = vector.load %arg4[%c0_9, %c0_10] : memref<128x10xbf16, #tpu.memory_space<vmem>>, vector<128x10xbf16>
    %cst_11 = arith.constant dense<0.000000e+00> : vector<2x10xf32>
    %28 = tpu.matmul %26, %27, %cst_11 {dimension_numbers = #tpu.dot_dimension_numbers<[1], [0], [0], [1], [0, 0, 1, 1], [], []>} : vector<2x128xbf16>, vector<128x10xbf16>, vector<2x10xf32> -> vector<2x10xf32>
    %c0_12 = arith.constant 0 : index
    %c0_13 = arith.constant 0 : index
    %29 = vector.load %arg5[%c0_12, %c0_13] : memref<1x10xf32, #tpu.memory_space<vmem>>, vector<1x10xf32>
    %30 = vector.broadcast %29 : vector<1x10xf32> to vector<2x10xf32>
    %31 = arith.addf %28, %30 : vector<2x10xf32>
    %c0_14 = arith.constant 0 : index
    %c0_15 = arith.constant 0 : index
    %32 = vector.load %arg6[%c0_14, %c0_15] : memref<2x10xf32, #tpu.memory_space<vmem>>, vector<2x10xf32>
    tpu.vector_store %arg6[%c0_14, %c0_15], %31 {strides = array<i32>} : memref<2x10xf32, #tpu.memory_space<vmem>>, vector<2x10xf32>,
    return
  }
  func.func @transform_0(%arg0: i32) -> (i32, i32) {
    %c0_i32 = arith.constant 0 : i32
    %c0_i32_0 = arith.constant 0 : i32
    return %arg0, %c0_i32 : i32, i32
  }
  func.func @transform_1(%arg0: i32) -> (i32, i32) {
    %c0_i32 = arith.constant 0 : i32
    %c0_i32_0 = arith.constant 0 : i32
    %c0_i32_1 = arith.constant 0 : i32
    return %c0_i32, %c0_i32_0 : i32, i32
  }
  func.func @transform_2(%arg0: i32) -> (i32, i32) {
    %c0_i32 = arith.constant 0 : i32
    %c0_i32_0 = arith.constant 0 : i32
    %c0_i32_1 = arith.constant 0 : i32
    return %c0_i32, %c0_i32_0 : i32, i32
  }
  func.func @transform_3(%arg0: i32) -> (i32, i32) {
    %c0_i32 = arith.constant 0 : i32
    %c0_i32_0 = arith.constant 0 : i32
    %c0_i32_1 = arith.constant 0 : i32
    return %c0_i32, %c0_i32_0 : i32, i32
  }
  func.func @transform_4(%arg0: i32) -> (i32, i32) {
    %c0_i32 = arith.constant 0 : i32
    %c0_i32_0 = arith.constant 0 : i32
    %c0_i32_1 = arith.constant 0 : i32
    return %c0_i32, %c0_i32_0 : i32, i32
  }
  func.func @transform_5(%arg0: i32) -> (i32, i32) {
    %c0_i32 = arith.constant 0 : i32
    %c0_i32_0 = arith.constant 0 : i32
    return %arg0, %c0_i32 : i32, i32
  }
}

</mosaic_0001>

<bundles_post_ra>
// kernel: deit_forward.6
= control target key start
LH: loop header
LB: loop body
LE: loop exit
PB: predicated region body
PF: predicated region fallthrough
CT: control target
= control target key end

     0   :  { %vm60_vm0 = vcmask 392192   ;;  %s231_s1 = inlined_call_operand.vmem [shape: bf16[48,128], index: 1, kind: input, shape index: {}]   ;;  %s232_s0 = inlined_call_operand.vmem [shape: bf16[32,48], index: 0, kind: input, shape index: {}]   ;;  %s233_s2 = inlined_call_operand.vmem [shape: f32[1,128], index: 2, kind: input, shape index: {}]   ;;  %s234_s3 = inlined_call_operand.vmem [shape: bf16[32,128], index: 3, kind: output, shape index: {}]  }
   0x1   :  { %v182_v0 = vld [vmem:[%s231_s1] sm:$0xff]   ;;  %v183_v1 = vld [vmem:[%s231_s1 + $0x8] sm:$0xff]   ;;  %v184_v3 = vld [vmem:[%s231_s1 + $0x10] sm:$0xff]  }
   0x2   :  { %172 = vmatprep.subr.bf16.mxu0 %v182_v0  ;;  %v185_v2 = vld [vmem:[%s232_s0] sm:$0xff]   ;;  %v186_v4 = vld [vmem:[%s232_s0 + $0x8] sm:$0xff]  }
   0x3   :  { %173 = vmatpush3.bf16.msra.mxu0 %v182_v0  ;;  %178 = vmatprep.mubr.msk.bf16.mxu0 %vm60_vm0, %v185_v2  ;;  %v140_v6 = vld [vmem:[%s233_s2] ss:$0 sm:$0xff] }
   0x4   :  { %174 = vmatprep.subr.bf16.mxu0 %v183_v1 }
   0x7   :  { %175 = vmatpush3.bf16.msra.mxu0 %v183_v1 }
   0x8   :  { %176 = vmatprep.subr.bf16.mxu0 %v184_v3 }
   0xb   :  { %177 = vmatpush3.bf16.msra.mxu0 %v184_v3 }
   0xe   :  { %179 = vmatmul.mubr.msk.bf16.vlgmr.msra.gmra.mrb[0].mxu0 %vm60_vm0, %v186_v4 }
  0xe1   :  { %v180_v5 = vpop.f32.mrb[0].mxu0 }
  0xe2   :  { %v101_v7 = vpop.f32.mrb[1].mxu0  ;;  %v110_v9 = vadd.f32 %v180_v5, %v140_v6 }
  0xe3   :  { %v181_v8 = vpop.f32.mrb[2].mxu0  ;;  %v102_v12 = vadd.f32 %v140_v6, %v101_v7 }
  0xe4   :  { %v113_v10 = vadd.f32 %v181_v8, %v140_v6  ;;  %v104_v11 = vpop.f32.mrb[3].mxu0 }
  0xe5   :  { %v105_v13 = vadd.f32 %v140_v6, %v104_v11 }
  0xe6   :  { %v164_v14 = vpack.c.bf16 %v113_v10, %v110_v9 }
  0xe7   :  { %v159_v15 = vpack.c.bf16 %v105_v13, %v102_v12 }
  0xe8   :  { %166 = vst [vmem:[%s234_s3 + $0x8] sm:$0xff] %v164_v14  }
  0xe9   :  { %160 = vst [vmem:[%s234_s3] sm:$0xff] %v159_v15  }

// kernel: deit_forward.11
= control target key start
LH: loop header
LB: loop body
LE: loop exit
PB: predicated region body
PF: predicated region fallthrough
CT: control target
= control target key end

     0   :  { %vm26_vm0 = vcmask 1041408   ;;  %s343_s0 = inlined_call_operand.vmem [shape: bf16[2,128], index: 0, kind: input, shape index: {}]   ;;  %s344_s1 = inlined_call_operand.vmem [shape: f32[1,128], index: 1, kind: input, shape index: {}]   ;;  %s345_s2 = inlined_call_operand.vmem [shape: f32[1,128], index: 2, kind: input, shape index: {}]   ;;  %s346_s3 = inlined_call_operand.vmem [shape: bf16[128,10], index: 3, kind: input, shape index: {}]   ;;  %s347_s4 = inlined_call_operand.vmem [shape: f32[1,10], index: 4, kind: input, shape index: {}]   ;;  %s348_s5 = inlined_call_operand.hbm [shape: f32[2,10], index: 5, kind: output, shape index: {}]  }
   0x1   :  { %v22_v0 = vld [vmem:[%s343_s0] sm:$0x1] }
   0x2   :  { %v23_v1 = vunpack.c.l.bf16 %v22_v0 }
   0x4   :  { %v27_v2 = vsel %vm26_vm0, %v23_v1, 0.0 }
   0x5   :  { %28 = vadd.xlane.f32.xlu0 %v27_v2 }
   0x6   :  { %10 = vsyncpa [#allocation3], 0  ;;  %v226_v3 = vld [vmem:[%s346_s3] sm:$0xff]   ;;  %v260_v4 = vmov 0.0   ;;  %v227_v5 = vld [vmem:[%s346_s3 + $0x8] sm:$0xff]   ;;  %vm261_vm1 = vmmov 0  }
   0x7   :  { %203 = vmatprep.subr.bf16.mxu0 %v260_v4  ;;  %v228_v11 = vld [vmem:[%s346_s3 + $0x10] sm:$0xff]   ;;  %v229_v12 = vld [vmem:[%s346_s3 + $0x18] sm:$0xff]   ;;  %v230_v13 = vld [vmem:[%s346_s3 + $0x20] sm:$0xff]   ;;  %219 = vmatprep.mubr.msk.bf16.mxu0 %vm261_vm1, %v260_v4  ;;  %s262_s15 = smov [#allocation2]   ;;  %vm167_vm2 = vcmask 74752  }
   0x8   :  { %204 = vmatpush3.bf16.msra.mxu0 %v226_v3  ;;  %v231_v14 = vld [vmem:[%s346_s3 + $0x28] sm:$0xff]   ;;  %v232_v15 = vld [vmem:[%s346_s3 + $0x30] sm:$0xff]   ;;  %v233_v16 = vld [vmem:[%s346_s3 + $0x38] sm:$0xff]   ;;  %s175_s16 = sshll.u32 %s262_s15, 4  ;;  %s176_s16 = int_to_ptr.vmem [resolvable:$true] %s175_s16 }
   0x9   :  { %205 = vmatprep.subr.bf16.mxu0 %v260_v4  ;;  %v183_v21 = vld [vmem:[%s344_s1] ss:$0 sm:$0xff]  ;;  %s236_s1 = scalar_lea.vmem %s176_s16, 32  ;;  %p241_p1 = scmp.lt.s32.totalorder %s176_s16, %s176_s16 }
   0xa   :  { %v184_v23 = vld [vmem:[%s345_s2] ss:$0 sm:$0xff]  ;;  %p237_p0 = scmp.ne.s32.totalorder %s176_s16, %s236_s1  ;;  %p242_p2 = scmp.lt.s32.totalorder %s236_s1, %s236_s1 }
   0xb   :  { %v185_v27 = vld [vmem:[%s347_s4] ss:$0 sm:$0xff] }
   0xc   :  { %206 = vmatpush3.bf16.msra.mxu0 %v227_v5  ;;  %p243_p3 = por %p242_p2, %p241_p1 }
   0xd   :  { %207 = vmatprep.subr.bf16.mxu0 %v260_v4 }
   0xe   :  { %p244_p4 = pnand %p243_p3, %p237_p0 }
  0x10   :  { %208 = vmatpush3.bf16.msra.mxu0 %v228_v11 }
  0x11   :  { %209 = vmatprep.subr.bf16.mxu0 %v260_v4 }
  0x14   :  { %210 = vmatpush3.bf16.msra.mxu0 %v229_v12 }
  0x15   :  { %211 = vmatprep.subr.bf16.mxu0 %v260_v4 }
  0x18   :  { %212 = vmatpush3.bf16.msra.mxu0 %v230_v13 }
  0x19   :  { %213 = vmatprep.subr.bf16.mxu0 %v260_v4 }
  0x1c   :  { %214 = vmatpush3.bf16.msra.mxu0 %v231_v14 }
  0x1d   :  { %215 = vmatprep.subr.bf16.mxu0 %v260_v4 }
  0x20   :  { %216 = vmatpush3.bf16.msra.mxu0 %v232_v15 }
  0x21   :  { %217 = vmatprep.subr.bf16.mxu0 %v260_v4 }
  0x24   :  { %218 = vmatpush3.bf16.msra.mxu0 %v233_v16 }
  0x92   :  { %v29_v6 = vpop.xlane.xlu0 %28 }
  0x93   :  { %v31_v7 = vmul.f32 0.0078125, %v29_v6 }
  0x95   :  { %v32_v8 = vsub.f32 %v23_v1, %v31_v7 }
  0x97   :  { %v33_v9 = vmul.f32 %v32_v8, %v32_v8 }
  0x99   :  { %v34_v10 = vsel %vm26_vm0, %v33_v9, 0.0 }
  0x9a   :  { %35 = vadd.xlane.f32.xlu0 %v34_v10 }
 0x127   :  { %v36_v17 = vpop.xlane.xlu0 %35 }
 0x128   :  { %v37_v18 = vmul.f32 0.0078125, %v36_v17 }
 0x12a   :  { %v38_v19 = vadd.f32 1e-05, %v37_v18 }
 0x12c   :  { %234 = vrsqrt.f32 %v38_v19 }
 0x136   :  { %v235_v20 = vpop.eup %234 }
 0x137   :  { %v40_v22 = vmul.f32 %v235_v20, %v32_v8 }
 0x139   :  { %v47_v24 = vmul.f32 %v183_v21, %v40_v22 }
 0x13b   :  { %v54_v25 = vadd.f32 %v184_v23, %v47_v24 }
 0x13d   :  { %v55_v26 = vpack.c.bf16 %v54_v25, %v54_v25 }
 0x13f   :  { %220 = vmatmul.mubr.bf16.vlgmr.msra.gmra.mrb[0].mxu0 %v55_v26 }
 0x212   :  { %v161_v28 = vpop.f32.mrb[0].mxu0 }
 0x213   :  { %v162_v29 = vadd.f32 %v185_v27, %v161_v28  ;;  %v221_v30 = vpop.f32.mrb[1].mxu0 }
 0x214   :  { %v164_v31 = vpop.f32.mrb[2].mxu0 }
 0x215   :  { %v222_v32 = vpop.f32.mrb[3].mxu0  ;;  %168 = vst.msk [vmem:[#allocation2] sm:$0x3] %vm167_vm2, %v162_v29 }
 0x216   :  { %247 = shalt.err (!%p244_p4)
}
 0x217   :  { %s248_s4 = scalar_lea.hbm %s348_s5, 32 }
 0x218   :  { %p249_p5 = scmp.ne.s32.totalorder %s348_s5, %s248_s4  ;;  %p252_p6 = scmp.lt.u32.totalorder %s248_s4, %s348_s5 }
 0x21a   :  { %p254_p7 = pnand %p252_p6, %p249_p5 }
 0x21c   :  { %257 = shalt.err (!%p254_p7)
}
 0x21d   :  { %178 = dma.vmem_to_hbm [thread:$0]  %s176_s16, 32, %s348_s5, [#allocation3]  }
 0x21e   :  { %258 = dma.done.wait [#allocation3], 32  }
 0x21f   :  { %259 = vsyncadd [#allocation3], 4294967264 }
 0x220   :  { %182 = vsyncpa [#allocation3], 1 }

// kernel: deit_forward.8
= control target key start
LH: loop header
LB: loop body
LE: loop exit
PB: predicated region body
PF: predicated region fallthrough
CT: control target
= control target key end

     0   :  { %vm47_vm0 = vcmask 1041408   ;;  %v1357_v60 = vmov 0   ;;  %s1850_s0 = inlined_call_operand.vmem [shape: bf16[34,128], index: 0, kind: input, shape index: {}]   ;;  %s1851_s3 = inlined_call_operand.vmem [shape: bf16[128,512], index: 3, kind: input, shape index: {}]   ;;  %s1852_s1 = inlined_call_operand.vmem [shape: f32[1,128], index: 1, kind: input, shape index: {}]   ;;  %s1853_s2 = inlined_call_operand.vmem [shape: f32[1,128], index: 2, kind: input, shape index: {}]   ;;  %s1854_s5 = inlined_call_operand.vmem [shape: bf16[512,128], index: 5, kind: input, shape index: {}]   ;;  %s1855_s4 = inlined_call_operand.vmem [shape: f32[1,512], index: 4, kind: input, shape index: {}]   ;;  %s1856_s6 = inlined_call_operand.vmem [shape: f32[1,128], index: 6, kind: input, shape index: {}]   ;;  %s1857_s7 = inlined_call_operand.vmem [shape: bf16[34,128], index: 7, kind: output, shape index: {}]  }
   0x1   :  { %v1139_v0 = vld [vmem:[%s1850_s0] sm:$0xff]   ;;  %v1156_v1 = vld [vmem:[%s1850_s0 + $0x8] sm:$0xff]   ;;  %v31_v4 = vld [vmem:[%s1850_s0 + $0x10] sm:$0x1]  ;;  %369 = vmatprep.mubr.bf16.mxu0 %v1357_v60  ;;  %430 = vmatprep.mubr.bf16.mxu1 %v1357_v60 }
   0x2   :  { %v1404_v2 = vunpack.c.l.bf16 %v1139_v0  ;;  %v1406_v3 = vunpack.c.l.bf16 %v1156_v1  ;;  %v1413_v5 = vunpack.c.h.bf16 %v1139_v0  ;;  %v1415_v6 = vunpack.c.h.bf16 %v1156_v1  ;;  %v1227_v9 = vld [vmem:[%s1851_s3 + $0x4] ss:$16 sps:$4 sm:$0xff]   ;;  %v1229_v10 = vld [vmem:[%s1851_s3 + $0xc] ss:$16 sps:$4 sm:$0xff]   ;;  %v1231_v11 = vld [vmem:[%s1851_s3] ss:$16 sps:$4 sm:$0xff]  }
   0x3   :  { %v1417_v7 = vunpack.c.l.bf16 %v31_v4  ;;  %337 = vmatprep.subr.bf16.mxu0 %v1227_v9  ;;  %v1232_v12 = vld [vmem:[%s1851_s3 + $0x8] ss:$16 sps:$4 sm:$0xff]   ;;  %398 = vmatprep.subr.bf16.mxu1 %v1229_v10  ;;  %v1233_v13 = vld [vmem:[%s1851_s3 + $0x24] ss:$16 sps:$4 sm:$0xff]   ;;  %v1235_v14 = vld [vmem:[%s1851_s3 + $0x2c] ss:$16 sps:$4 sm:$0xff]  }
   0x4   :  { %39 = vadd.xlane.f32.xlu0 %v1404_v2  ;;  %43 = vadd.xlane.f32.xlu1 %v1406_v3  ;;  %v1237_v36 = vld [vmem:[%s1851_s3 + $0x20] ss:$16 sps:$4 sm:$0xff]   ;;  %v1238_v37 = vld [vmem:[%s1851_s3 + $0x28] ss:$16 sps:$4 sm:$0xff]   ;;  %v1239_v38 = vld [vmem:[%s1851_s3 + $0x44] ss:$16 sps:$4 sm:$0xff]  }
   0x5   :  { %v48_v8 = vsel %vm47_vm0, %v1417_v7, 0.0  ;;  %338 = vmatpush1.bf16.msra.mxu0 %v1231_v11  ;;  %399 = vmatpush1.bf16.msra.mxu1 %v1232_v12  ;;  %v1241_v39 = vld [vmem:[%s1851_s3 + $0x4c] ss:$16 sps:$4 sm:$0xff]   ;;  %v1243_v40 = vld [vmem:[%s1851_s3 + $0x40] ss:$16 sps:$4 sm:$0xff]  }
   0x6   :  { %339 = vmatprep.subr.bf16.mxu0 %v1233_v13  ;;  %400 = vmatprep.subr.bf16.mxu1 %v1235_v14  ;;  %v1244_v41 = vld [vmem:[%s1851_s3 + $0x48] ss:$16 sps:$4 sm:$0xff]   ;;  %v1245_v42 = vld [vmem:[%s1851_s3 + $0x64] ss:$16 sps:$4 sm:$0xff]   ;;  %v1247_v43 = vld [vmem:[%s1851_s3 + $0x6c] ss:$16 sps:$4 sm:$0xff]  }
   0x7   :  { %v1249_v44 = vld [vmem:[%s1851_s3 + $0x60] ss:$16 sps:$4 sm:$0xff]   ;;  %v1250_v45 = vld [vmem:[%s1851_s3 + $0x68] ss:$16 sps:$4 sm:$0xff]   ;;  %v1251_v46 = vld [vmem:[%s1851_s3 + $0x84] ss:$16 sps:$4 sm:$0xff]  }
   0x8   :  { %41 = vadd.xlane.f32.xlu0 %v1413_v5  ;;  %45 = vadd.xlane.f32.xlu1 %v1415_v6  ;;  %v1253_v47 = vld [vmem:[%s1851_s3 + $0x8c] ss:$16 sps:$4 sm:$0xff]   ;;  %v1255_v48 = vld [vmem:[%s1851_s3 + $0x80] ss:$16 sps:$4 sm:$0xff]   ;;  %v1256_v49 = vld [vmem:[%s1851_s3 + $0x88] ss:$16 sps:$4 sm:$0xff]  }
   0x9   :  { %340 = vmatpush1.bf16.msra.mxu0 %v1237_v36  ;;  %401 = vmatpush1.bf16.msra.mxu1 %v1238_v37  ;;  %v1257_v50 = vld [vmem:[%s1851_s3 + $0xa4] ss:$16 sps:$4 sm:$0xff]   ;;  %v1259_v51 = vld [vmem:[%s1851_s3 + $0xac] ss:$16 sps:$4 sm:$0xff]   ;;  %v1261_v52 = vld [vmem:[%s1851_s3 + $0xa0] ss:$16 sps:$4 sm:$0xff]  }
   0xa   :  { %341 = vmatprep.subr.bf16.mxu0 %v1239_v38  ;;  %402 = vmatprep.subr.bf16.mxu1 %v1241_v39  ;;  %v1262_v53 = vld [vmem:[%s1851_s3 + $0xa8] ss:$16 sps:$4 sm:$0xff]   ;;  %v1263_v54 = vld [vmem:[%s1851_s3 + $0xc4] ss:$16 sps:$4 sm:$0xff]   ;;  %v1265_v55 = vld [vmem:[%s1851_s3 + $0xcc] ss:$16 sps:$4 sm:$0xff]  }
   0xb   :  { %v1267_v56 = vld [vmem:[%s1851_s3 + $0xc0] ss:$16 sps:$4 sm:$0xff]   ;;  %v1268_v57 = vld [vmem:[%s1851_s3 + $0xc8] ss:$16 sps:$4 sm:$0xff]   ;;  %v1269_v58 = vld [vmem:[%s1851_s3 + $0xe4] ss:$16 sps:$4 sm:$0xff]  }
   0xc   :  { %49 = vadd.xlane.f32.xlu0 %v48_v8  ;;  %v1271_v59 = vld [vmem:[%s1851_s3 + $0xec] ss:$16 sps:$4 sm:$0xff]   ;;  %v1273_v61 = vld [vmem:[%s1851_s3 + $0xe0] ss:$16 sps:$4 sm:$0xff]   ;;  %v1274_v62 = vld [vmem:[%s1851_s3 + $0xe8] ss:$16 sps:$4 sm:$0xff]  }
   0xd   :  { %342 = vmatpush1.bf16.msra.mxu0 %v1243_v40  ;;  %403 = vmatpush1.bf16.msra.mxu1 %v1244_v41 }
   0xe   :  { %343 = vmatprep.subr.bf16.mxu0 %v1245_v42  ;;  %404 = vmatprep.subr.bf16.mxu1 %v1247_v43 }
  0x11   :  { %344 = vmatpush1.bf16.msra.mxu0 %v1249_v44  ;;  %405 = vmatpush1.bf16.msra.mxu1 %v1250_v45  ;;  %v1275_v45 = vld [vmem:[%s1854_s5 + $0x40] sm:$0xff]  }
  0x12   :  { %345 = vmatprep.subr.bf16.mxu0 %v1251_v46  ;;  %406 = vmatprep.subr.bf16.mxu1 %v1253_v47  ;;  %v1276_v46 = vld [vmem:[%s1854_s5 + $0xc0] sm:$0xff]  }
  0x13   :  { %v1278_v47 = vld [vmem:[%s1854_s5 + $0x80] sm:$0xff]  }
  0x15   :  { %346 = vmatpush1.bf16.msra.mxu0 %v1255_v48  ;;  %407 = vmatpush1.bf16.msra.mxu1 %v1256_v49  ;;  %v1279_v48 = vld [vmem:[%s1854_s5 + $0x48] sm:$0xff]  }
  0x16   :  { %347 = vmatprep.subr.bf16.mxu0 %v1257_v50  ;;  %408 = vmatprep.subr.bf16.mxu1 %v1259_v51  ;;  %v1280_v49 = vld [vmem:[%s1854_s5 + $0xc8] sm:$0xff]  }
  0x17   :  { %v1281_v50 = vld [vmem:[%s1854_s5 + $0x8] sm:$0xff]  }
  0x18   :  { %v1282_v51 = vld [vmem:[%s1854_s5 + $0x88] sm:$0xff]  }
  0x19   :  { %348 = vmatpush1.bf16.msra.mxu0 %v1261_v52  ;;  %409 = vmatpush1.bf16.msra.mxu1 %v1262_v53  ;;  %v1283_v52 = vld [vmem:[%s1854_s5 + $0x50] sm:$0xff]  }
  0x1a   :  { %349 = vmatprep.subr.bf16.mxu0 %v1263_v54  ;;  %410 = vmatprep.subr.bf16.mxu1 %v1265_v55  ;;  %v1284_v53 = vld [vmem:[%s1854_s5 + $0xd0] sm:$0xff]  }
  0x1b   :  { %v1285_v54 = vld [vmem:[%s1854_s5 + $0x10] sm:$0xff]  }
  0x1c   :  { %v1286_v55 = vld [vmem:[%s1854_s5 + $0x90] sm:$0xff]  }
  0x1d   :  { %350 = vmatpush1.bf16.msra.mxu0 %v1267_v56  ;;  %411 = vmatpush1.bf16.msra.mxu1 %v1268_v57  ;;  %v1287_v56 = vld [vmem:[%s1854_s5 + $0x58] sm:$0xff]  }
  0x1e   :  { %351 = vmatprep.subr.bf16.mxu0 %v1269_v58  ;;  %412 = vmatprep.subr.bf16.mxu1 %v1271_v59  ;;  %v1288_v57 = vld [vmem:[%s1854_s5 + $0xd8] sm:$0xff]  }
  0x1f   :  { %v1289_v58 = vld [vmem:[%s1854_s5 + $0x18] sm:$0xff]  }
  0x20   :  { %v1290_v59 = vld [vmem:[%s1854_s5 + $0x98] sm:$0xff]  }
  0x21   :  { %352 = vmatpush1.bf16.msra.mxu0 %v1273_v61  ;;  %413 = vmatpush1.bf16.msra.mxu1 %v1274_v62  ;;  %v1292_v61 = vld [vmem:[%s1854_s5 + $0xe0] sm:$0xff]  }
  0x22   :  { %1158 = vmatprep.subr.bf16.mxu0 %v1275_v45  ;;  %1192 = vmatprep.subr.bf16.mxu1 %v1276_v46  ;;  %v1293_v62 = vld [vmem:[%s1854_s5 + $0x20] sm:$0xff]  }
  0x91   :  { %v40_v15 = vpop.xlane.xlu0 %39  ;;  %v44_v16 = vpop.xlane.xlu1 %43 }
  0x92   :  { %v52_v17 = vmul.f32 0.0078125, %v40_v15  ;;  %v54_v18 = vmul.f32 0.0078125, %v44_v16 }
  0x94   :  { %v1442_v19 = vsub.f32 %v1404_v2, %v52_v17  ;;  %v1445_v20 = vsub.f32 %v1406_v3, %v54_v18 }
  0x95   :  { %v42_v21 = vpop.xlane.xlu0 %41  ;;  %v46_v22 = vpop.xlane.xlu1 %45 }
  0x96   :  { %v53_v23 = vmul.f32 0.0078125, %v42_v21  ;;  %v62_v24 = vmul.f32 %v1442_v19, %v1442_v19  ;;  %v55_v25 = vmul.f32 0.0078125, %v46_v22  ;;  %v64_v28 = vmul.f32 %v1445_v20, %v1445_v20 }
  0x98   :  { %v1450_v26 = vsub.f32 %v1413_v5, %v53_v23  ;;  %67 = vadd.xlane.f32.xlu1 %v62_v24  ;;  %v1453_v27 = vsub.f32 %v1415_v6, %v55_v25  ;;  %v1061_v23 = vld [vmem:[%s1852_s1] ss:$0 sm:$0xff] }
  0x99   :  { %v50_v29 = vpop.xlane.xlu0 %49 }
  0x9a   :  { %v56_v30 = vmul.f32 0.0078125, %v50_v29  ;;  %v63_v31 = vmul.f32 %v1450_v26, %v1450_v26  ;;  %v65_v33 = vmul.f32 %v1453_v27, %v1453_v27 }
  0x9c   :  { %v1460_v32 = vsub.f32 %v1417_v7, %v56_v30  ;;  %71 = vadd.xlane.f32.xlu1 %v64_v28  ;;  %69 = vadd.xlane.f32.xlu0 %v63_v31  ;;  %v1062_v30 = vld [vmem:[%s1853_s2] ss:$0 sm:$0xff] }
  0x9e   :  { %v66_v34 = vmul.f32 %v1460_v32, %v1460_v32 }
  0xa0   :  { %73 = vadd.xlane.f32.xlu0 %v65_v33  ;;  %v75_v35 = vsel %vm47_vm0, %v66_v34, 0.0 }
  0xa1   :  { %76 = vadd.xlane.f32.xlu1 %v75_v35 }
 0x125   :  { %v68_v63 = vpop.xlane.xlu1 %67 }
 0x126   :  { %v78_v0 = vmul.f32 0.0078125, %v68_v63  ;;  %v1294_v63 = vld [vmem:[%s1854_s5 + $0xa0] sm:$0xff]  }
 0x128   :  { %v83_v1 = vadd.f32 1e-05, %v78_v0  ;;  %v1295_v0 = vld [vmem:[%s1854_s5 + $0x68] sm:$0xff]  }
 0x129   :  { %v72_v4 = vpop.xlane.xlu1 %71  ;;  %v70_v8 = vpop.xlane.xlu0 %69 }
 0x12a   :  { %1307 = vrsqrt.f32 %v83_v1  ;;  %v80_v9 = vmul.f32 0.0078125, %v72_v4  ;;  %v79_v10 = vmul.f32 0.0078125, %v70_v8  ;;  %v1296_v1 = vld [vmem:[%s1854_s5 + $0xe8] sm:$0xff]  }
 0x12b   :  { %v1297_v4 = vld [vmem:[%s1854_s5 + $0x28] sm:$0xff]  }
 0x12c   :  { %v84_v11 = vadd.f32 1e-05, %v79_v10  ;;  %v85_v12 = vadd.f32 1e-05, %v80_v9  ;;  %v1298_v8 = vld [vmem:[%s1854_s5 + $0xa8] sm:$0xff]   ;;  %v1299_v9 = vld [vmem:[%s1854_s5 + $0x70] sm:$0xff]  }
 0x12d   :  { %v74_v13 = vpop.xlane.xlu0 %73  ;;  %v1300_v10 = vld [vmem:[%s1854_s5 + $0xf0] sm:$0xff]  }
 0x12e   :  { %v81_v14 = vmul.f32 0.0078125, %v74_v13  ;;  %v77_v15 = vpop.xlane.xlu1 %76  ;;  %1309 = vrsqrt.f32 %v84_v11  ;;  %v1301_v11 = vld [vmem:[%s1854_s5 + $0x30] sm:$0xff]   ;;  %v1303_v13 = vld [vmem:[%s1854_s5 + $0x78] sm:$0xff]  }
 0x12f   :  { %v82_v16 = vmul.f32 0.0078125, %v77_v15  ;;  %1311 = vrsqrt.f32 %v85_v12  ;;  %v1302_v12 = vld [vmem:[%s1854_s5 + $0xb0] sm:$0xff]   ;;  %v1305_v15 = vld [vmem:[%s1854_s5 + $0x38] sm:$0xff]  }
 0x130   :  { %v86_v17 = vadd.f32 1e-05, %v81_v14  ;;  %v1304_v14 = vld [vmem:[%s1854_s5 + $0xf8] sm:$0xff]  }
 0x131   :  { %v87_v18 = vadd.f32 1e-05, %v82_v16  ;;  %v1306_v16 = vld [vmem:[%s1854_s5 + $0xb8] sm:$0xff]  }
 0x132   :  { %1313 = vrsqrt.f32 %v86_v17  ;;  %v157_v17 = vlaneseq }
 0x133   :  { %1315 = vrsqrt.f32 %v87_v18 }
 0x134   :  { %v1308_v21 = vpop.eup %1307  ;;  %v158_v18 = vshrl.u32 %v157_v17, 7 }
 0x135   :  { %v93_v22 = vmul.f32 %v1308_v21, %v1442_v19 }
 0x136   :  { %v159_v21 = vsub.s32 0, %v158_v18 }
 0x137   :  { %v104_v28 = vmul.f32 %v1061_v23, %v93_v22  ;;  %v167_v22 = vsub.s32 2, %v158_v18 }
 0x138   :  { %v1310_v24 = vpop.eup %1309 }
 0x139   :  { %v94_v25 = vmul.f32 %v1310_v24, %v1450_v26  ;;  %v1312_v29 = vpop.eup %1311  ;;  %v115_v35 = vadd.f32 %v1062_v30, %v104_v28  ;;  %v163_v24 = vsub.s32 1, %v158_v18 }
 0x13a   :  { %v95_v36 = vmul.f32 %v1312_v29, %v1445_v20  ;;  %v171_v29 = vsub.s32 3, %v158_v18 }
 0x13b   :  { %v105_v33 = vmul.f32 %v1061_v23, %v94_v25 }
 0x13c   :  { %v1314_v31 = vpop.eup %1313  ;;  %v106_v26 = vmul.f32 %v1061_v23, %v95_v36 }
 0x13d   :  { %v96_v34 = vmul.f32 %v1314_v31, %v1453_v27  ;;  %v116_v19 = vadd.f32 %v1062_v30, %v105_v33  ;;  %v1316_v39 = vpop.eup %1315 }
 0x13e   :  { %v97_v41 = vmul.f32 %v1316_v39, %v1460_v32  ;;  %v117_v42 = vadd.f32 %v1062_v30, %v106_v26  ;;  %v1277_v32 = vld [vmem:[%s1854_s5] sm:$0xff]  }
 0x13f   :  { %v120_v37 = vpack.c.bf16 %v116_v19, %v115_v35  ;;  %v107_v38 = vmul.f32 %v1061_v23, %v96_v34 }
 0x140   :  { %v108_v44 = vmul.f32 %v1061_v23, %v97_v41  ;;  %v155_v23 = vld [vmem:[%s1855_s4] sm:$0xf] }
 0x141   :  { %370 = vmatmul.mubr.bf16.vlgmr.msra.gmra.mrb[0].mxu0 %v120_v37  ;;  %431 = vmatmul.mubr.bf16.vlgmr.msra.gmra.mrb[0].mxu1 %v120_v37  ;;  %v118_v40 = vadd.f32 %v1062_v30, %v107_v38  ;;  %v1655_v25 = vrot.slane %v155_v23, %v159_v21  ;;  %v1657_v28 = vrot.slane %v155_v23, %v167_v22 }
 0x142   :  { %379 = vmatprep.mubr.bf16.mxu0 %v1357_v60  ;;  %440 = vmatprep.mubr.bf16.mxu1 %v1357_v60  ;;  %v119_v27 = vadd.f32 %v1062_v30, %v108_v44  ;;  %v1659_v33 = vrot.slane %v155_v23, %v163_v24 }
 0x143   :  { %v121_v43 = vpack.c.bf16 %v118_v40, %v117_v42  ;;  %1159 = vmatpush3.bf16.msra.mxu0 %v1277_v32  ;;  %1193 = vmatpush3.bf16.msra.mxu1 %v1278_v47  ;;  %v1663_v40 = vrot.slane %v155_v23, %v171_v29 }
 0x144   :  { %v122_v20 = vpack.c.bf16 %v119_v27, %v119_v27  ;;  %1160 = vmatprep.subr.bf16.mxu0 %v1279_v48  ;;  %1194 = vmatprep.subr.bf16.mxu1 %v1280_v49 }
 0x147   :  { %1161 = vmatpush3.bf16.msra.mxu0 %v1281_v50  ;;  %1195 = vmatpush3.bf16.msra.mxu1 %v1282_v51 }
 0x148   :  { %1162 = vmatprep.subr.bf16.mxu0 %v1283_v52  ;;  %1196 = vmatprep.subr.bf16.mxu1 %v1284_v53 }
 0x149   :  { %380 = vmatmul.mubr.bf16.gmra.mrb[4].mxu0 %v121_v43  ;;  %441 = vmatmul.mubr.bf16.gmra.mrb[4].mxu1 %v121_v43 }
 0x14a   :  { %389 = vmatprep.mubr.bf16.mxu0 %v1357_v60  ;;  %450 = vmatprep.mubr.bf16.mxu1 %v1357_v60  ;;  %v1291_v60 = vld [vmem:[%s1854_s5 + $0x60] sm:$0xff]  }
 0x14b   :  { %1163 = vmatpush3.bf16.msra.mxu0 %v1285_v54  ;;  %1197 = vmatpush3.bf16.msra.mxu1 %v1286_v55 }
 0x14c   :  { %1164 = vmatprep.subr.bf16.mxu0 %v1287_v56  ;;  %1198 = vmatprep.subr.bf16.mxu1 %v1288_v57 }
 0x14f   :  { %1165 = vmatpush3.bf16.msra.mxu0 %v1289_v58  ;;  %1199 = vmatpush3.bf16.msra.mxu1 %v1290_v59 }
 0x150   :  { %1166 = vmatprep.subr.bf16.mxu0 %v1291_v60  ;;  %1200 = vmatprep.subr.bf16.mxu1 %v1292_v61 }
 0x151   :  { %390 = vmatmul.mubr.bf16.gmra.mrb[8].mxu0 %v122_v20  ;;  %451 = vmatmul.mubr.bf16.gmra.mrb[8].mxu1 %v122_v20 }
 0x153   :  { %1167 = vmatpush3.bf16.msra.mxu0 %v1293_v62  ;;  %1201 = vmatpush3.bf16.msra.mxu1 %v1294_v63 }
 0x154   :  { %1168 = vmatprep.subr.bf16.mxu0 %v1295_v0  ;;  %1202 = vmatprep.subr.bf16.mxu1 %v1296_v1 }
 0x157   :  { %1169 = vmatpush3.bf16.msra.mxu0 %v1297_v4  ;;  %1203 = vmatpush3.bf16.msra.mxu1 %v1298_v8 }
 0x158   :  { %1170 = vmatprep.subr.bf16.mxu0 %v1299_v9  ;;  %1204 = vmatprep.subr.bf16.mxu1 %v1300_v10 }
 0x15b   :  { %1171 = vmatpush3.bf16.msra.mxu0 %v1301_v11  ;;  %1205 = vmatpush3.bf16.msra.mxu1 %v1302_v12 }
 0x15c   :  { %1172 = vmatprep.subr.bf16.mxu0 %v1303_v13  ;;  %1206 = vmatprep.subr.bf16.mxu1 %v1304_v14 }
 0x15f   :  { %1173 = vmatpush3.bf16.msra.mxu0 %v1305_v15  ;;  %1207 = vmatpush3.bf16.msra.mxu1 %v1306_v16 }
 0x214   :  { %v371_v30 = vpop.f32.mrb[0].mxu0  ;;  %v432_v31 = vpop.f32.mrb[0].mxu1 }
 0x215   :  { %v372_v34 = vadd.f32 %v371_v30, %v1655_v25  ;;  %v433_v35 = vadd.f32 %v432_v31, %v1657_v28  ;;  %v373_v19 = vpop.f32.mrb[1].mxu0  ;;  %v434_v36 = vpop.f32.mrb[1].mxu1 }
 0x216   :  { %v375_v37 = vpop.f32.mrb[2].mxu0  ;;  %v436_v38 = vpop.f32.mrb[2].mxu1  ;;  %v1666_v41 = vadd.f32 %v373_v19, %v1659_v33  ;;  %v1676_v48 = vadd.f32 %v434_v36, %v1663_v40 }
 0x217   :  { %v479_v39 = vmul.f32 0.044715, %v372_v34  ;;  %v481_v26 = vmul.f32 0.044715, %v433_v35  ;;  %v1669_v42 = vadd.f32 %v375_v37, %v1655_v25  ;;  %v1672_v43 = vadd.f32 %v436_v38, %v1657_v28  ;;  %v377_v44 = vpop.f32.mrb[3].mxu0  ;;  %v438_v27 = vpop.f32.mrb[3].mxu1 }
 0x218   :  { %v1679_v50 = vmul.f32 0.5, %v372_v34  ;;  %v480_v51 = vmul.f32 0.044715, %v1666_v41  ;;  %v1684_v53 = vadd.f32 %v377_v44, %v1659_v33  ;;  %v1688_v59 = vadd.f32 %v438_v27, %v1663_v40 }
 0x219   :  { %v499_v20 = vmul.f32 %v479_v39, %v372_v34  ;;  %v501_v45 = vmul.f32 %v481_v26, %v433_v35  ;;  %v483_v46 = vmul.f32 0.044715, %v1669_v42  ;;  %v485_v49 = vmul.f32 0.044715, %v1672_v43 }
 0x21a   :  { %v1690_v62 = vmul.f32 0.5, %v433_v35  ;;  %v500_v14 = vmul.f32 %v480_v51, %v1666_v41  ;;  %v482_v15 = vmul.f32 0.044715, %v1676_v48  ;;  %v484_v17 = vmul.f32 0.044715, %v1684_v53 }
 0x21b   :  { %v519_v32 = vmul.f32 %v499_v20, %v372_v34  ;;  %v521_v47 = vmul.f32 %v501_v45, %v433_v35  ;;  %v503_v52 = vmul.f32 %v483_v46, %v1669_v42  ;;  %v505_v58 = vmul.f32 %v485_v49, %v1672_v43 }
 0x21c   :  { %v381_v54 = vpop.f32.mrb[4].mxu0  ;;  %v442_v55 = vpop.f32.mrb[4].mxu1  ;;  %v486_v21 = vmul.f32 0.044715, %v1688_v59  ;;  %v520_v19 = vmul.f32 %v500_v14, %v1666_v41  ;;  %v502_v36 = vmul.f32 %v482_v15, %v1676_v48  ;;  %v504_v26 = vmul.f32 %v484_v17, %v1684_v53 }
 0x21d   :  { %v539_v56 = vadd.f32 %v519_v32, %v372_v34  ;;  %v541_v57 = vadd.f32 %v521_v47, %v433_v35  ;;  %v383_v60 = vpop.f32.mrb[5].mxu0  ;;  %v444_v61 = vpop.f32.mrb[5].mxu1  ;;  %v523_v63 = vmul.f32 %v503_v52, %v1669_v42  ;;  %v1694_v0 = vadd.f32 %v381_v54, %v1655_v25 }
 0x21e   :  { %v1697_v1 = vadd.f32 %v442_v55, %v1657_v28  ;;  %v385_v4 = vpop.f32.mrb[6].mxu0  ;;  %v446_v8 = vpop.f32.mrb[6].mxu1  ;;  %v525_v11 = vmul.f32 %v505_v58, %v1672_v43  ;;  %v1707_v22 = vadd.f32 %v383_v60, %v1659_v33  ;;  %v1713_v34 = vadd.f32 %v444_v61, %v1663_v40 }
 0x21f   :  { %v559_v9 = vmul.f32 0.7978846, %v539_v56  ;;  %v561_v10 = vmul.f32 0.7978846, %v541_v57  ;;  %v387_v12 = vpop.f32.mrb[7].mxu0  ;;  %v448_v13 = vpop.f32.mrb[7].mxu1  ;;  %v543_v16 = vadd.f32 %v523_v63, %v1669_v42  ;;  %v1716_v35 = vadd.f32 %v385_v4, %v1655_v25 }
 0x220   :  { %v545_v18 = vadd.f32 %v525_v11, %v1672_v43  ;;  %v487_v24 = vmul.f32 0.044715, %v1694_v0  ;;  %v489_v29 = vmul.f32 0.044715, %v1697_v1  ;;  %v488_v31 = vmul.f32 0.044715, %v1707_v22 }
 0x221   :  { %1317 = vtanh.f32 %v559_v9  ;;  %v563_v23 = vmul.f32 0.7978846, %v543_v16  ;;  %v1721_v37 = vadd.f32 %v446_v8, %v1657_v28  ;;  %v490_v44 = vmul.f32 0.044715, %v1713_v34 }
 0x222   :  { %1319 = vtanh.f32 %v561_v10  ;;  %v565_v30 = vmul.f32 0.7978846, %v545_v18  ;;  %v491_v27 = vmul.f32 0.044715, %v1716_v35  ;;  %v506_v46 = vmul.f32 %v486_v21, %v1688_v59 }
 0x223   :  { %1321 = vtanh.f32 %v563_v23  ;;  %v507_v32 = vmul.f32 %v487_v24, %v1694_v0  ;;  %v1729_v47 = vadd.f32 %v387_v12, %v1659_v33  ;;  %v1732_v49 = vadd.f32 %v448_v13, %v1663_v40 }
 0x224   :  { %v391_v38 = vpop.f32.mrb[8].mxu0  ;;  %v452_v39 = vpop.f32.mrb[8].mxu1  ;;  %1323 = vtanh.f32 %v565_v30  ;;  %v509_v54 = vmul.f32 %v489_v29, %v1697_v1  ;;  %v508_v55 = vmul.f32 %v488_v31, %v1707_v22  ;;  %v493_v56 = vmul.f32 0.044715, %v1721_v37 }
 0x225   :  { %v393_v20 = vpop.f32.mrb[9].mxu0  ;;  %v454_v45 = vpop.f32.mrb[9].mxu1  ;;  %v1738_v57 = vadd.f32 %v391_v38, %v1655_v25  ;;  %v510_v61 = vmul.f32 %v490_v44, %v1713_v34  ;;  %v511_v63 = vmul.f32 %v491_v27, %v1716_v35  ;;  %v492_v4 = vmul.f32 0.044715, %v1729_v47 }
 0x226   :  { %v395_v51 = vpop.f32.mrb[10].mxu0  ;;  %v456_v52 = vpop.f32.mrb[10].mxu1  ;;  %v494_v8 = vmul.f32 0.044715, %v1732_v49  ;;  %v463_v9 = vmul.f32 0.5, %v1669_v42  ;;  %v465_v10 = vmul.f32 0.5, %v1672_v43  ;;  %v524_v11 = vmul.f32 %v504_v26, %v1684_v53 }
 0x227   :  { %v396_v58 = vpop.f32.mrb[11].mxu0  ;;  %v457_v60 = vpop.f32.mrb[11].mxu1  ;;  %v1748_v12 = vadd.f32 %v452_v39, %v1657_v28  ;;  %v522_v25 = vmul.f32 %v502_v36, %v1676_v48  ;;  %v526_v13 = vmul.f32 %v506_v46, %v1688_v59  ;;  %v527_v14 = vmul.f32 %v507_v32, %v1694_v0 }
 0x228   :  { %v512_v15 = vmul.f32 %v492_v4, %v1729_v47  ;;  %v529_v17 = vmul.f32 %v509_v54, %v1697_v1  ;;  %v528_v42 = vmul.f32 %v508_v55, %v1707_v22  ;;  %v513_v43 = vmul.f32 %v493_v56, %v1721_v37 }
 0x229   :  { %v514_v18 = vmul.f32 %v494_v8, %v1732_v49  ;;  %v530_v28 = vmul.f32 %v510_v61, %v1713_v34  ;;  %v531_v23 = vmul.f32 %v511_v63, %v1716_v35  ;;  %v495_v24 = vmul.f32 0.044715, %v1738_v57 }
 0x22a   :  { %v540_v29 = vadd.f32 %v520_v19, %v1666_v41  ;;  %v497_v30 = vmul.f32 0.044715, %v1748_v12  ;;  %v1764_v31 = vadd.f32 %v393_v20, %v1659_v33  ;;  %v1767_v36 = vadd.f32 %v454_v45, %v1663_v40 }
 0x22b   :  { %v1318_v16 = vpop.eup %1317  ;;  %v544_v38 = vadd.f32 %v524_v11, %v1684_v53  ;;  %v532_v26 = vmul.f32 %v512_v15, %v1729_v47  ;;  %v542_v27 = vadd.f32 %v522_v25, %v1676_v48  ;;  %v546_v46 = vadd.f32 %v526_v13, %v1688_v59 }
 0x22c   :  { %v1320_v21 = vpop.eup %1319  ;;  %v560_v44 = vmul.f32 0.7978846, %v540_v29  ;;  %v534_v19 = vmul.f32 %v514_v18, %v1732_v49  ;;  %v599_v52 = vadd.f32 1.0, %v1318_v16  ;;  %v496_v58 = vmul.f32 0.044715, %v1764_v31 }
 0x22d   :  { %v1322_v39 = vpop.eup %1321  ;;  %v564_v51 = vmul.f32 0.7978846, %v544_v38  ;;  %v562_v20 = vmul.f32 0.7978846, %v542_v27  ;;  %v566_v40 = vmul.f32 0.7978846, %v546_v46  ;;  %v533_v8 = vmul.f32 %v513_v43, %v1721_v37 }
 0x22e   :  { %v1324_v32 = vpop.eup %1323  ;;  %v603_v33 = vadd.f32 1.0, %v1322_v39  ;;  %1325 = vtanh.f32 %v560_v44  ;;  %v601_v45 = vadd.f32 1.0, %v1320_v21  ;;  %v1775_v54 = vmul.f32 %v599_v52, %v1679_v50 }
 0x22f   :  { %1327 = vtanh.f32 %v564_v51  ;;  %v605_v56 = vadd.f32 1.0, %v1324_v32  ;;  %v498_v60 = vmul.f32 0.044715, %v1767_v36  ;;  %v548_v50 = vadd.f32 %v528_v42, %v1707_v22 }
 0x230   :  { %v1777_v55 = vmul.f32 %v603_v33, %v463_v9  ;;  %1329 = vtanh.f32 %v562_v20  ;;  %v1782_v61 = vmul.f32 %v601_v45, %v1690_v62  ;;  %v515_v9 = vmul.f32 %v495_v24, %v1738_v57 }
 0x231   :  { %1331 = vtanh.f32 %v566_v40  ;;  %v1786_v4 = vmul.f32 %v605_v56, %v465_v10  ;;  %v552_v11 = vadd.f32 %v532_v26, %v1729_v47  ;;  %v550_v25 = vadd.f32 %v530_v28, %v1713_v34 }
 0x232   :  { %v639_v63 = vpack.c.bf16 %v1777_v55, %v1775_v54  ;;  %v517_v13 = vmul.f32 %v497_v30, %v1748_v12  ;;  %v568_v15 = vmul.f32 0.7978846, %v548_v50  ;;  %v554_v16 = vadd.f32 %v534_v19, %v1732_v49 }
 0x233   :  { %v641_v62 = vpack.c.bf16 %v1786_v4, %v1782_v61  ;;  %v516_v10 = vmul.f32 %v496_v58, %v1764_v31  ;;  %v572_v18 = vmul.f32 0.7978846, %v552_v11  ;;  %v570_v42 = vmul.f32 0.7978846, %v550_v25 }
 0x234   :  { %v547_v43 = vadd.f32 %v527_v14, %v1694_v0  ;;  %v518_v21 = vmul.f32 %v498_v60, %v1767_v36  ;;  %1333 = vtanh.f32 %v568_v15  ;;  %v574_v24 = vmul.f32 0.7978846, %v554_v16 }
 0x235   :  { %v551_v28 = vadd.f32 %v531_v23, %v1716_v35  ;;  %v460_v29 = vmul.f32 0.5, %v1666_v41  ;;  %1335 = vtanh.f32 %v572_v18  ;;  %v549_v38 = vadd.f32 %v529_v17, %v1697_v1 }
 0x236   :  { %v567_v30 = vmul.f32 0.7978846, %v547_v43  ;;  %v464_v39 = vmul.f32 0.5, %v1684_v53  ;;  %1337 = vtanh.f32 %v570_v42  ;;  %v553_v44 = vadd.f32 %v533_v8, %v1721_v37 }
 0x237   :  { %v571_v26 = vmul.f32 0.7978846, %v551_v28  ;;  %v462_v14 = vmul.f32 0.5, %v1676_v48  ;;  %1339 = vtanh.f32 %v574_v24  ;;  %v569_v46 = vmul.f32 0.7978846, %v549_v38 }
 0x238   :  { %v1326_v27 = vpop.eup %1325  ;;  %v536_v32 = vmul.f32 %v516_v10, %v1764_v31  ;;  %1341 = vtanh.f32 %v567_v30  ;;  %v573_v41 = vmul.f32 0.7978846, %v553_v44  ;;  %v538_v51 = vmul.f32 %v518_v21, %v1767_v36 }
 0x239   :  { %v1328_v23 = vpop.eup %1327  ;;  %v600_v19 = vadd.f32 1.0, %v1326_v27  ;;  %v466_v53 = vmul.f32 0.5, %v1688_v59  ;;  %1343 = vtanh.f32 %v571_v26  ;;  %v535_v11 = vmul.f32 %v515_v9, %v1738_v57 }
 0x23a   :  { %v1330_v17 = vpop.eup %1329  ;;  %v604_v52 = vadd.f32 1.0, %v1328_v23  ;;  %v556_v33 = vadd.f32 %v536_v32, %v1764_v31  ;;  %1345 = vtanh.f32 %v569_v46  ;;  %v558_v45 = vadd.f32 %v538_v51, %v1767_v36 }
 0x23b   :  { %v1332_v20 = vpop.eup %1331  ;;  %v620_v40 = vmul.f32 %v600_v19, %v460_v29  ;;  %v602_v48 = vadd.f32 1.0, %v1330_v17  ;;  %1347 = vtanh.f32 %v573_v41  ;;  %v537_v59 = vmul.f32 %v517_v13, %v1748_v12 }
 0x23c   :  { %v624_v56 = vmul.f32 %v604_v52, %v464_v39  ;;  %v606_v58 = vadd.f32 1.0, %v1332_v20  ;;  %v576_v60 = vmul.f32 0.7978846, %v556_v33  ;;  %v578_v8 = vmul.f32 0.7978846, %v558_v45 }
 0x23d   :  { %v622_v50 = vmul.f32 %v602_v48, %v462_v14  ;;  %v555_v10 = vadd.f32 %v535_v11, %v1738_v57  ;;  %v557_v21 = vadd.f32 %v537_v59, %v1748_v12  ;;  %v468_v9 = vmul.f32 0.5, %v1707_v22 }
 0x23e   :  { %v640_v25 = vpack.c.bf16 %v624_v56, %v620_v40  ;;  %v626_v15 = vmul.f32 %v606_v58, %v466_v53  ;;  %1349 = vtanh.f32 %v576_v60  ;;  %v1334_v16 = vpop.eup %1333  ;;  %v472_v28 = vmul.f32 0.5, %v1729_v47 }
 0x23f   :  { %1351 = vtanh.f32 %v578_v8  ;;  %v1336_v18 = vpop.eup %1335  ;;  %v608_v43 = vadd.f32 1.0, %v1334_v16  ;;  %v575_v29 = vmul.f32 0.7978846, %v555_v10  ;;  %v470_v38 = vmul.f32 0.5, %v1713_v34 }
 0x240   :  { %946 = vmatprep.mubr.bf16.mxu0 %v640_v25  ;;  %v642_v42 = vpack.c.bf16 %v626_v15, %v622_v50  ;;  %v1338_v24 = vpop.eup %1337  ;;  %v612_v13 = vadd.f32 1.0, %v1336_v18  ;;  %v474_v39 = vmul.f32 0.5, %v1732_v49  ;;  %v577_v44 = vmul.f32 0.7978846, %v557_v21  ;;  %v1095_v21 = vld [vmem:[%s1856_s6] ss:$0 sm:$0xff] }
 0x241   :  { %947 = vmatmul.mubr.bf16.vlgmr.msra.gmra.mrb[12].mxu0 %v639_v63  ;;  %v1340_v30 = vpop.eup %1339  ;;  %v610_v26 = vadd.f32 1.0, %v1338_v24  ;;  %v628_v54 = vmul.f32 %v608_v43, %v468_v9  ;;  %1353 = vtanh.f32 %v575_v29  ;;  %v467_v63 = vmul.f32 0.5, %v1694_v0 }
 0x242   :  { %1002 = vmatprep.mubr.bf16.mxu1 %v642_v42  ;;  %v1342_v27 = vpop.eup %1341  ;;  %v632_v55 = vmul.f32 %v612_v13, %v472_v28  ;;  %v614_v22 = vadd.f32 1.0, %v1340_v30  ;;  %v471_v14 = vmul.f32 0.5, %v1716_v35  ;;  %1355 = vtanh.f32 %v577_v44 }
 0x243   :  { %1003 = vmatmul.mubr.bf16.vlgmr.msra.gmra.mrb[12].mxu1 %v641_v62  ;;  %v1344_v47 = vpop.eup %1343  ;;  %v607_v46 = vadd.f32 1.0, %v1342_v27  ;;  %v630_v32 = vmul.f32 %v610_v26, %v470_v38  ;;  %v469_v61 = vmul.f32 0.5, %v1697_v1  ;;  %v473_v4 = vmul.f32 0.5, %v1721_v37 }
 0x244   :  { %v1346_v34 = vpop.eup %1345  ;;  %v644_v49 = vpack.c.bf16 %v632_v55, %v628_v54  ;;  %v634_v23 = vmul.f32 %v614_v22, %v474_v39  ;;  %v611_v19 = vadd.f32 1.0, %v1344_v47  ;;  %v476_v35 = vmul.f32 0.5, %v1764_v31 }
 0x245   :  { %v1348_v41 = vpop.eup %1347  ;;  %v609_v62 = vadd.f32 1.0, %v1346_v34  ;;  %v627_v17 = vmul.f32 %v607_v46, %v467_v63  ;;  %v478_v56 = vmul.f32 0.5, %v1767_v36  ;;  %v475_v31 = vmul.f32 0.5, %v1738_v57 }
 0x246   :  { %954 = vmatprep.mubr.bf16.mxu0 %v644_v49  ;;  %v646_v51 = vpack.c.bf16 %v634_v23, %v630_v32  ;;  %v631_v52 = vmul.f32 %v611_v19, %v471_v14  ;;  %v613_v0 = vadd.f32 1.0, %v1348_v41  ;;  %v477_v59 = vmul.f32 0.5, %v1748_v12 }
 0x247   :  { %v629_v40 = vmul.f32 %v609_v62, %v469_v61 }
 0x248   :  { %v1350_v53 = vpop.eup %1349  ;;  %1010 = vmatprep.mubr.bf16.mxu1 %v646_v51  ;;  %v643_v20 = vpack.c.bf16 %v631_v52, %v627_v17  ;;  %v633_v48 = vmul.f32 %v613_v0, %v473_v4 }
 0x249   :  { %v1352_v33 = vpop.eup %1351  ;;  %v616_v45 = vadd.f32 1.0, %v1350_v53 }
 0x24a   :  { %v618_v1 = vadd.f32 1.0, %v1352_v33  ;;  %955 = vmatmul.mubr.bf16.gmra.mrb[16].mxu0 %v643_v20  ;;  %v645_v37 = vpack.c.bf16 %v633_v48, %v629_v40 }
 0x24b   :  { %v636_v58 = vmul.f32 %v616_v45, %v476_v35  ;;  %v1354_v50 = vpop.eup %1353 }
 0x24c   :  { %v638_v60 = vmul.f32 %v618_v1, %v478_v56  ;;  %1011 = vmatmul.mubr.bf16.gmra.mrb[16].mxu1 %v645_v37  ;;  %v1356_v11 = vpop.eup %1355  ;;  %v615_v15 = vadd.f32 1.0, %v1354_v50 }
 0x24d   :  { %v648_v8 = vpack.c.bf16 %v636_v58, %v636_v58  ;;  %v617_v16 = vadd.f32 1.0, %v1356_v11 }
 0x24e   :  { %v650_v25 = vpack.c.bf16 %v638_v60, %v638_v60  ;;  %v635_v10 = vmul.f32 %v615_v15, %v475_v31 }
 0x24f   :  { %962 = vmatprep.mubr.bf16.mxu0 %v648_v8  ;;  %v637_v36 = vmul.f32 %v617_v16, %v477_v59 }
 0x250   :  { %1018 = vmatprep.mubr.bf16.mxu1 %v650_v25  ;;  %v647_v18 = vpack.c.bf16 %v635_v10, %v635_v10 }
 0x251   :  { %v649_v42 = vpack.c.bf16 %v637_v36, %v637_v36 }
 0x252   :  { %963 = vmatmul.mubr.bf16.gmra.mrb[20].mxu0 %v647_v18 }
 0x254   :  { %1019 = vmatmul.mubr.bf16.gmra.mrb[20].mxu1 %v649_v42 }
 0x314   :  { %v1174_v43 = vpop.f32.mrb[12].mxu0 }
 0x315   :  { %v1175_v24 = vpop.f32.mrb[13].mxu0 }
 0x316   :  { %v1208_v9 = vpop.f32.mrb[12].mxu1  ;;  %v1176_v57 = vadd.f32 %v1175_v24, %v1174_v43  ;;  %v1177_v28 = vpop.f32.mrb[14].mxu0 }
 0x317   :  { %v1209_v13 = vpop.f32.mrb[13].mxu1  ;;  %v1178_v29 = vpop.f32.mrb[15].mxu0 }
 0x318   :  { %v949_v12 = vadd.f32 %v1176_v57, %v1095_v21  ;;  %v1210_v30 = vadd.f32 %v1209_v13, %v1208_v9  ;;  %v1211_v38 = vpop.f32.mrb[14].mxu1  ;;  %v1179_v39 = vadd.f32 %v1178_v29, %v1177_v28 }
 0x319   :  { %v1212_v26 = vpop.f32.mrb[15].mxu1 }
 0x31a   :  { %v1005_v44 = vadd.f32 %v1210_v30, %v949_v12  ;;  %v952_v27 = vadd.f32 %v1179_v39, %v1095_v21  ;;  %v1213_v54 = vadd.f32 %v1212_v26, %v1211_v38 }
 0x31c   :  { %v1008_v55 = vadd.f32 %v1213_v54, %v952_v27  ;;  %v1026_v22 = vadd.f32 %v1404_v2, %v1005_v44 }
 0x31d   :  { %v1180_v63 = vpop.f32.mrb[16].mxu0 }
 0x31e   :  { %v1027_v47 = vadd.f32 %v1413_v5, %v1008_v55  ;;  %v1181_v14 = vpop.f32.mrb[17].mxu0 }
 0x31f   :  { %v1214_v34 = vpop.f32.mrb[16].mxu1  ;;  %v1182_v49 = vadd.f32 %v1181_v14, %v1180_v63  ;;  %v1183_v32 = vpop.f32.mrb[18].mxu0 }
 0x320   :  { %v1149_v46 = vpack.c.bf16 %v1027_v47, %v1026_v22  ;;  %v1215_v23 = vpop.f32.mrb[17].mxu1  ;;  %v1184_v19 = vpop.f32.mrb[19].mxu0 }
 0x321   :  { %v957_v41 = vadd.f32 %v1182_v49, %v1095_v21  ;;  %v1216_v61 = vadd.f32 %v1215_v23, %v1214_v34  ;;  %v1217_v4 = vpop.f32.mrb[18].mxu1  ;;  %v1185_v62 = vadd.f32 %v1184_v19, %v1183_v32 }
 0x322   :  { %1150 = vst [vmem:[%s1857_s7] sm:$0xff] %v1149_v46   ;;  %v1218_v51 = vpop.f32.mrb[19].mxu1 }
 0x323   :  { %v1013_v2 = vadd.f32 %v1216_v61, %v957_v41  ;;  %v960_v17 = vadd.f32 %v1185_v62, %v1095_v21  ;;  %v1219_v5 = vadd.f32 %v1218_v51, %v1217_v4 }
 0x325   :  { %v1016_v52 = vadd.f32 %v1219_v5, %v960_v17  ;;  %v1186_v0 = vpop.f32.mrb[20].mxu0  ;;  %v1028_v53 = vadd.f32 %v1406_v3, %v1013_v2 }
 0x326   :  { %v1187_v20 = vpop.f32.mrb[21].mxu0 }
 0x327   :  { %v1029_v35 = vadd.f32 %v1415_v6, %v1016_v52  ;;  %v1220_v33 = vpop.f32.mrb[20].mxu1  ;;  %v1188_v40 = vadd.f32 %v1187_v20, %v1186_v0  ;;  %v1189_v45 = vpop.f32.mrb[22].mxu0 }
 0x328   :  { %v1221_v48 = vpop.f32.mrb[21].mxu1  ;;  %v1190_v58 = vpop.f32.mrb[23].mxu0 }
 0x329   :  { %v1154_v56 = vpack.c.bf16 %v1029_v35, %v1028_v53  ;;  %v1222_v1 = vadd.f32 %v1221_v48, %v1220_v33  ;;  %v1223_v37 = vpop.f32.mrb[22].mxu1  ;;  %v965_v60 = vadd.f32 %v1188_v40, %v1095_v21 }
 0x32a   :  { %v1224_v50 = vpop.f32.mrb[23].mxu1 }
 0x32b   :  { %1157 = vst [vmem:[%s1857_s7 + $0x8] sm:$0xff] %v1154_v56   ;;  %v1021_v8 = vadd.f32 %v1222_v1, %v965_v60 }
 0x32d   :  { %v1030_v3 = vadd.f32 %v1021_v8, %v1417_v7 }
 0x32f   :  { %v1137_v11 = vpack.c.bf16 %v1030_v3, %v1030_v3 }
 0x331   :  { %1056 = vst [vmem:[%s1857_s7 + $0x10] sm:$0x1] %v1137_v11 }

// kernel: deit_forward.7
= control target key start
LH: loop header
LB: loop body
LE: loop exit
PB: predicated region body
PF: predicated region fallthrough
CT: control target
= control target key end

     0   :  { %s1945_s24 = smov 0   ;;  %s2285_s0 = inlined_call_operand.vmem [shape: bf16[2,17,128], index: 0, kind: input, shape index: {}]   ;;  %s2286_s1 = inlined_call_operand.vmem [shape: f32[1,128], index: 1, kind: input, shape index: {}]   ;;  %s2287_s2 = inlined_call_operand.vmem [shape: f32[1,128], index: 2, kind: input, shape index: {}]   ;;  %s2288_s3 = inlined_call_operand.vmem [shape: bf16[128,384], index: 3, kind: input, shape index: {}]   ;;  %s2289_s4 = inlined_call_operand.vmem [shape: f32[1,384], index: 4, kind: input, shape index: {}]   ;;  %s2290_s5 = inlined_call_operand.vmem [shape: bf16[128,128], index: 5, kind: input, shape index: {}]   ;;  %s2291_s6 = inlined_call_operand.vmem [shape: f32[1,128], index: 6, kind: input, shape index: {}]   ;;  %s2292_s7 = inlined_call_operand.vmem [shape: bf16[2,17,128], index: 7, kind: output, shape index: {}]  }
   0x1 LB: > { %s1532_s25 = sadd.s32 4294967295, %s1899_s24   ;;  %p1536_p0 = scmp.ge.s32.totalorder %s1899_s24, 1  ;;  %s1899_s24 = sphi %s1945_s24, %s17_s24  }
   0x2   : > { %p237_p1 = scmp.lt.s32.totalorder %s1899_s24, 3 }
   0x4   : > { %p238_p2 = pnand %p1536_p0, %p237_p1 }
   0x5   : > { %p269_p3 = scmp.lt.s32.totalorder (!%p238_p2), %s1532_s25, 1  ;;  %vm292_vm0 = vcmask (!%p238_p2), 1040384   ;;  %v1799_v6 = vld [vmem:[%s2288_s3 + $0x4] ss:$12 sps:$4 sm:$0xff] (!%p238_p2)   ;;  %v1801_v7 = vld [vmem:[%s2288_s3] ss:$12 sps:$4 sm:$0xff] (!%p238_p2)  }
   0x6   : > { %241 = sbr.rel (%p238_p2) target bundleno = 2318 (0x90e), region = 48  ;;  %v1802_v8 = vld [vmem:[%s2288_s3 + $0x8] ss:$12 sps:$4 sm:$0xff] (!%p238_p2)   ;;  %522 = vmatprep.subr.bf16.mxu0 (!%p238_p2), %v1799_v6  ;;  %v1805_v23 = vld [vmem:[%s2288_s3 + $0x18] ss:$12 sps:$4 sm:$0xff] (!%p238_p2)   ;;  %v1901_v39 = vmov (!%p238_p2), 0  }
   0x7   : > { %v1803_v9 = vld [vmem:[%s2288_s3 + $0x1c] ss:$12 sps:$4 sm:$0xff] (!%p238_p2)   ;;  %1659 = vmatprep.subr.bf16.mxu1 (!%p238_p2), %v1802_v8  ;;  %523 = vmatpush1.bf16.msra.mxu0 (!%p238_p2), %v1801_v7  ;;  %v1806_v24 = vld [vmem:[%s2288_s3 + $0x20] ss:$12 sps:$4 sm:$0xff] (!%p238_p2)   ;;  %v1810_v27 = vld [vmem:[%s2288_s3 + $0x38] ss:$12 sps:$4 sm:$0xff] (!%p238_p2)  }
   0x8   : > { %1660 = vmatpush3.bf16.msra.mxu1 (!%p238_p2), %v1802_v8  ;;  %524 = vmatprep.subr.bf16.mxu0 (!%p238_p2), %v1803_v9  ;;  %v1807_v25 = vld [vmem:[%s2288_s3 + $0x34] ss:$12 sps:$4 sm:$0xff] (!%p238_p2)   ;;  %v1809_v26 = vld [vmem:[%s2288_s3 + $0x30] ss:$12 sps:$4 sm:$0xff] (!%p238_p2)   ;;  %v1811_v28 = vld [vmem:[%s2288_s3 + $0x4c] ss:$12 sps:$4 sm:$0xff] (!%p238_p2)   ;;  %v379_v8 = vlaneseq (!%p238_p2) }
   0x9   : > { %1661 = vmatprep.subr.bf16.mxu1 (!%p238_p2), %v1806_v24  ;;  %v1813_v29 = vld [vmem:[%s2288_s3 + $0x48] ss:$12 sps:$4 sm:$0xff] (!%p238_p2)   ;;  %v1814_v30 = vld [vmem:[%s2288_s3 + $0x50] ss:$12 sps:$4 sm:$0xff] (!%p238_p2)   ;;  %v1817_v32 = vld [vmem:[%s2288_s3 + $0x60] ss:$12 sps:$4 sm:$0xff] (!%p238_p2)   ;;  %554 = vmatprep.mubr.bf16.mxu0 (!%p238_p2), %v1901_v39 }
   0xa   : > { %v1815_v31 = vld [vmem:[%s2288_s3 + $0x64] ss:$12 sps:$4 sm:$0xff] (!%p238_p2)   ;;  %v1818_v33 = vld [vmem:[%s2288_s3 + $0x68] ss:$12 sps:$4 sm:$0xff] (!%p238_p2)   ;;  %v1822_v35 = vld [vmem:[%s2288_s3 + $0x80] ss:$12 sps:$4 sm:$0xff] (!%p238_p2)  }
   0xb   : > { %525 = vmatpush1.bf16.msra.mxu0 (!%p238_p2), %v1805_v23  ;;  %v1819_v34 = vld [vmem:[%s2288_s3 + $0x7c] ss:$12 sps:$4 sm:$0xff] (!%p238_p2)   ;;  %v1821_v36 = vld [vmem:[%s2288_s3 + $0x78] ss:$12 sps:$4 sm:$0xff] (!%p238_p2)   ;;  %v1823_v37 = vld [vmem:[%s2288_s3 + $0x94] ss:$12 sps:$4 sm:$0xff] (!%p238_p2)  }
   0xc   : > { %1662 = vmatpush3.bf16.msra.mxu1 (!%p238_p2), %v1806_v24  ;;  %526 = vmatprep.subr.bf16.mxu0 (!%p238_p2), %v1807_v25  ;;  %v1826_v38 = vld [vmem:[%s2288_s3 + $0x98] ss:$12 sps:$4 sm:$0xff] (!%p238_p2)   ;;  %v1825_v40 = vld [vmem:[%s2288_s3 + $0x90] ss:$12 sps:$4 sm:$0xff] (!%p238_p2)   ;;  %v1829_v43 = vld [vmem:[%s2288_s3 + $0xa8] ss:$12 sps:$4 sm:$0xff] (!%p238_p2)  }
   0xd   : > { %s2294_s25 = smov (!%p269_p3, %s1532_s25), 1  ;;  %1663 = vmatprep.subr.bf16.mxu1 %v1810_v27  ;;  %v1827_v41 = vld [vmem:[%s2288_s3 + $0xac] ss:$12 sps:$4 sm:$0xff]   ;;  %v1830_v42 = vld [vmem:[%s2288_s3 + $0xb0] ss:$12 sps:$4 sm:$0xff]   ;;  %v380_v9 = vshrl.u32 %v379_v8, 7 }
   0xe   : > { %s1771_s26 = smul.u32 12, %s2294_s25  ;;  %v1539_v55 = vld [vmem:[%s2286_s1] ss:$0 sm:$0xff]  ;;  %vm627_vm1 = vcmask 261120   ;;  %vm688_vm2 = vcmask 138240   ;;  %vm695_vm3 = vcmask 131072  }
   0xf   : > { %527 = vmatpush1.bf16.msra.mxu0 %v1809_v26  ;;  %v1540_v61 = vld [vmem:[%s2287_s2] ss:$0 sm:$0xff]  ;;  %s1902_s21 = smov 96   ;;  %s1903_s22 = smov 64   ;;  %vm1324_vm4 = vcmask 523264   ;;  %vm1328_vm5 = vcmask 785408  }
  0x10   : > { %s273_s29 = scalar_lea.vmem %s2285_s0, %s1771_s26  ;;  %1664 = vmatpush3.bf16.msra.mxu1 %v1810_v27  ;;  %528 = vmatprep.subr.bf16.mxu0 %v1811_v28  ;;  %s1904_s23 = smov 32   ;;  %vm1472_vm6 = vsmask.f32 256 }
  0x11   : > { %v1599_v0 = vld [vmem:[%s273_s29] sm:$0xff]   ;;  %v282_v1 = vld [vmem:[%s273_s29 + $0x8] sm:$0x1]  ;;  %1665 = vmatprep.subr.bf16.mxu1 %v1814_v30  ;;  %s278_s27 = scalar_lea.vmem %s2292_s7, %s1771_s26  ;;  %vm1473_vm7 = vmand %vm292_vm0, %vm1472_vm6 }
  0x12   : > { %v1961_v2 = vunpack.c.l.bf16 %v1599_v0  ;;  %v1963_v3 = vunpack.c.l.bf16 %v282_v1  ;;  %v1968_v5 = vunpack.c.h.bf16 %v1599_v0 }
  0x13   : > { %529 = vmatpush1.bf16.msra.mxu0 %v1813_v29 }
  0x14   : > { %288 = vadd.xlane.f32.xlu0 %v1961_v2  ;;  %v293_v4 = vsel %vm292_vm0, %v1963_v3, 0.0  ;;  %1666 = vmatpush3.bf16.msra.mxu1 %v1814_v30 }
  0x15   : > { %294 = vadd.xlane.f32.xlu1 %v293_v4  ;;  %530 = vmatprep.subr.bf16.mxu0 %v1815_v31 }
  0x16   : > { %1667 = vmatprep.subr.bf16.mxu1 %v1818_v33 }
  0x17   : > { %531 = vmatpush1.bf16.msra.mxu0 %v1817_v32 }
  0x18   : > { %290 = vadd.xlane.f32.xlu0 %v1968_v5  ;;  %1668 = vmatpush3.bf16.msra.mxu1 %v1818_v33 }
  0x19   : > { %532 = vmatprep.subr.bf16.mxu0 %v1819_v34  ;;  %1669 = vmatprep.subr.bf16.mxu1 %v1822_v35  ;;  %v2079_v34 = vsel %vm292_vm0, 65535, %v1901_v39 }
  0x1b   : > { %533 = vmatpush1.bf16.msra.mxu0 %v1821_v36 }
  0x1c   : > { %1670 = vmatpush3.bf16.msra.mxu1 %v1822_v35  ;;  %534 = vmatprep.subr.bf16.mxu0 %v1823_v37 }
  0x1d   : > { %1671 = vmatprep.subr.bf16.mxu1 %v1826_v38 }
  0x1f   : > { %535 = vmatpush1.bf16.msra.mxu0 %v1825_v40 }
  0x20   : > { %1672 = vmatpush3.bf16.msra.mxu1 %v1826_v38  ;;  %536 = vmatprep.subr.bf16.mxu0 %v1827_v41 }
  0x21   : > { %1673 = vmatprep.subr.bf16.mxu1 %v1830_v42 }
  0x23   : > { %537 = vmatpush1.bf16.msra.mxu0 %v1829_v43 }
  0x24   : > { %1674 = vmatpush3.bf16.msra.mxu1 %v1830_v42 }
  0xa1   : > { %v289_v10 = vpop.xlane.xlu0 %288 }
  0xa2   : > { %v297_v11 = vmul.f32 0.0078125, %v289_v10  ;;  %v295_v12 = vpop.xlane.xlu1 %294  ;;  %v389_v10 = vsub.s32 2, %v380_v9 }
  0xa3   : > { %v299_v13 = vmul.f32 0.0078125, %v295_v12  ;;  %v381_v12 = vsub.s32 0, %v380_v9 }
  0xa4   : > { %v1984_v14 = vsub.f32 %v1961_v2, %v297_v11  ;;  %v377_v11 = vld [vmem:[%s2289_s4] sm:$0x7] }
  0xa5   : > { %v1987_v15 = vsub.f32 %v1963_v3, %v299_v13  ;;  %v291_v16 = vpop.xlane.xlu0 %290  ;;  %v385_v13 = vsub.s32 1, %v380_v9 }
  0xa6   : > { %v298_v17 = vmul.f32 0.0078125, %v291_v16  ;;  %v303_v18 = vmul.f32 %v1984_v14, %v1984_v14 }
  0xa7   : > { %v305_v19 = vmul.f32 %v1987_v15, %v1987_v15 }
  0xa8   : > { %v1994_v20 = vsub.f32 %v1968_v5, %v298_v17  ;;  %306 = vadd.xlane.f32.xlu1 %v303_v18  ;;  %v386_v17 = vrot.slane %v377_v11, %v385_v13 }
  0xa9   : > { %v310_v21 = vsel %vm292_vm0, %v305_v19, 0.0 }
  0xaa   : > { %v304_v22 = vmul.f32 %v1994_v20, %v1994_v20 }
  0xac   : > { %311 = vadd.xlane.f32.xlu1 %v310_v21  ;;  %308 = vadd.xlane.f32.xlu0 %v304_v22 }
 0x135   : > { %v307_v44 = vpop.xlane.xlu1 %306 }
 0x136   : > { %v313_v45 = vmul.f32 0.0078125, %v307_v44 }
 0x138   : > { %v316_v46 = vadd.f32 1e-05, %v313_v45 }
 0x139   : > { %v312_v47 = vpop.xlane.xlu1 %311  ;;  %v309_v48 = vpop.xlane.xlu0 %308 }
 0x13a   : > { %1839 = vrsqrt.f32 %v316_v46  ;;  %v315_v49 = vmul.f32 0.0078125, %v312_v47  ;;  %v314_v50 = vmul.f32 0.0078125, %v309_v48 }
 0x13c   : > { %v318_v51 = vadd.f32 1e-05, %v315_v49  ;;  %v317_v52 = vadd.f32 1e-05, %v314_v50 }
 0x13e   : > { %1841 = vrsqrt.f32 %v318_v51 }
 0x13f   : > { %1843 = vrsqrt.f32 %v317_v52 }
 0x144   : > { %v1840_v53 = vpop.eup %1839 }
 0x145   : > { %v322_v54 = vmul.f32 %v1840_v53, %v1984_v14  ;;  %v390_v14 = vrot.slane %v377_v11, %v389_v10 }
 0x147   : > { %v331_v60 = vmul.f32 %v1539_v55, %v322_v54 }
 0x148   : > { %v1842_v56 = vpop.eup %1841 }
 0x149   : > { %v1844_v57 = vpop.eup %1843  ;;  %v324_v58 = vmul.f32 %v1842_v56, %v1987_v15  ;;  %v340_v1 = vadd.f32 %v1540_v61, %v331_v60  ;;  %v382_v15 = vrot.slane %v377_v11, %v381_v12 }
 0x14a   : > { %v323_v59 = vmul.f32 %v1844_v57, %v1994_v20 }
 0x14b   : > { %v333_v62 = vmul.f32 %v1539_v55, %v324_v58 }
 0x14c   : > { %v332_v63 = vmul.f32 %v1539_v55, %v323_v59 }
 0x14d   : > { %v342_v0 = vadd.f32 %v1540_v61, %v333_v62 }
 0x14e   : > { %v341_v4 = vadd.f32 %v1540_v61, %v332_v63 }
 0x14f   : > { %v344_v6 = vpack.c.bf16 %v342_v0, %v342_v0 }
 0x150   : > { %v343_v7 = vpack.c.bf16 %v341_v4, %v340_v1 }
 0x152   : > { %555 = vmatmul.mubr.bf16.vlgmr.msra.gmra.mrb[0].mxu0 %v343_v7  ;;  %1675 = vmatprep.mubr.bf16.mxu1 %v343_v7 }
 0x153   : > { %1676 = vmatmul.mubr.bf16.vlgmr.msra.gmra.mrb[0].mxu1 %v344_v6  ;;  %564 = vmatprep.mubr.bf16.mxu0 %v1901_v39 }
 0x15a   : > { %565 = vmatmul.mubr.bf16.gmra.mrb[4].mxu0 %v344_v6 }
 0x225   : > { %v556_v16 = vpop.f32.mrb[0].mxu0 }
 0x226   : > { %v558_v18 = vpop.f32.mrb[1].mxu0  ;;  %v1677_v19 = vpop.f32.mrb[0].mxu1  ;;  %v557_v23 = vadd.f32 %v556_v16, %v382_v15 }
 0x227   : > { %v616_v20 = vadd.f32 %v1677_v19, %v390_v14  ;;  %v560_v21 = vpop.f32.mrb[2].mxu0  ;;  %v607_v22 = vpop.f32.mrb[1].mxu1  ;;  %v559_v27 = vadd.f32 %v558_v18, %v386_v17 }
 0x228   : > { %v561_v24 = vadd.f32 %v560_v21, %v382_v15  ;;  %v562_v25 = vpop.f32.mrb[3].mxu0  ;;  %v1678_v26 = vpop.f32.mrb[2].mxu1  ;;  %v608_v32 = vadd.f32 %v607_v22, %v390_v14 }
 0x229   : > { %v563_v28 = vadd.f32 %v562_v25, %v386_v17  ;;  %v610_v29 = vpop.f32.mrb[3].mxu1  ;;  %v2073_v30 = vpack.c.bf16 %v616_v20, %v616_v20 }
 0x22a   : > { %v2075_v31 = vpack.c.bf16 %v561_v24, %v557_v23  ;;  %v611_v33 = vadd.f32 %v610_v29, %v390_v14 }
 0x22b   : > { %v2081_v35 = vpack.c.bf16 %v563_v28, %v559_v27  ;;  %v728_v39 = vand.u32 %v2079_v34, %v2073_v30 }
 0x22c   : > { %v2083_v36 = vpack.c.bf16 %v611_v33, %v608_v32  ;;  %1683 = vmatprep.mubr.msk.bf16.mxu0 %vm627_vm1, %v2075_v31 }
 0x22d   : > { %v566_v37 = vpop.f32.mrb[4].mxu0  ;;  %1763 = vmatprep.subr.msk.bf16.mxu0 %vm627_vm1, %v2081_v35  ;;  %v635_v38 = vsel %vm627_vm1, %v2081_v35, 0 }
 0x22e   : > { %v568_v40 = vpop.f32.mrb[5].mxu0  ;;  %1680 = vmatpush3.bf16.xpose.msra.mxu0 %v635_v38  ;;  %1687 = vmatprep.subr.bf16.mxu1 %v2083_v36  ;;  %v567_v46 = vadd.f32 %v566_v37, %v382_v15 }
 0x22f   : > { %v569_v41 = vadd.f32 %v568_v40, %v386_v17  ;;  %v570_v42 = vpop.f32.mrb[6].mxu0  ;;  %1688 = vmatpush3.bf16.msra.mxu1 %v2083_v36 }
 0x230   : > { %v571_v43 = vpop.f32.mrb[7].mxu0  ;;  %1689 = vmatprep.subr.bf16.mxu1 %v728_v39  ;;  %v2101_v47 = vpack.c.bf16 %v567_v46, %v567_v46 }
 0x231   : > { %v2095_v44 = vpack.c.bf16 %v569_v41, %v569_v41 }
 0x233   : > { %1764 = vmatprep.subr.msk.bf16.mxu0 %vm627_vm1, %v2095_v44  ;;  %1690 = vmatpush3.bf16.msra.mxu1 %v728_v39  ;;  %v638_v45 = vsel %vm627_vm1, %v2095_v44, 0 }
 0x236   : > { %1682 = vmatpush3.bf16.xpose.msra.mxu0 %v638_v45 }
 0x23d   : > { %1684 = vmatmul.mubr.msk.bf16.vlgmr.msra.gmra.mrb[8].mxu0 %vm627_vm1, %v2101_v47 }
 0x310   : > { %v1685_v48 = vpop.f32.mrb[8].mxu0 }
 0x311   : > { %v674_v49 = vpop.f32.mrb[9].mxu0  ;;  %v696_v54 = vsel %vm695_vm3, %v1685_v48, -inf }
 0x312   : > { %v1686_v50 = vpop.f32.mrb[10].mxu0  ;;  %v689_v51 = vsel %vm688_vm2, %v674_v49, -inf }
 0x313   : > { %690 = vmax.xlane.f32.xlu0 %v689_v51  ;;  %v677_v52 = vpop.f32.mrb[11].mxu0 }
 0x314   : > { %v692_v53 = vsel %vm688_vm2, %v677_v52, -inf }
 0x315   : > { %693 = vmax.xlane.f32.xlu1 %v692_v53 }
 0x317   : > { %697 = vmax.xlane.f32.xlu0 %v696_v54 }
 0x326   : > { %792 = vrot.lane.b32.xlu1 %v2081_v35, %s1902_s21 }
 0x32a   : > { %786 = vrot.lane.b32.xlu1 %v2075_v31, %s1902_s21 }
 0x32d   : > { %794 = vrot.lane.b32.xlu0 %v2095_v44, %s1902_s21 }
 0x32e   : > { %959 = vrot.lane.b32.xlu1 %v2081_v35, %s1903_s22 }
 0x331   : > { %961 = vrot.lane.b32.xlu0 %v2095_v44, %s1903_s22 }
 0x332   : > { %788 = vrot.lane.b32.xlu1 %v2101_v47, %s1902_s21 }
 0x335   : > { %957 = vrot.lane.b32.xlu0 %v2101_v47, %s1903_s22 }
 0x336   : > { %955 = vrot.lane.b32.xlu1 %v2075_v31, %s1903_s22 }
 0x3a0   : > { %v691_v55 = vpop.xlane.xlu0 %690 }
 0x3a1   : > { %v699_v56 = vsub.f32 %v674_v49, %v691_v55 }
 0x3a2   : > { %v694_v57 = vpop.xlane.xlu1 %693 }
 0x3a3   : > { %v702_v58 = vmul.f32 1.442695, %v699_v56  ;;  %v700_v59 = vsub.f32 %v677_v52, %v694_v57 }
 0x3a4   : > { %v698_v60 = vpop.xlane.xlu0 %697 }
 0x3a5   : > { %v704_v61 = vmul.f32 1.442695, %v700_v59  ;;  %v701_v62 = vsub.f32 %v1685_v48, %v698_v60  ;;  %1845 = vpow2.f32 %v702_v58 }
 0x3a6   : > { %v793_v63 = vpop.permute.xlu1 %792 }
 0x3a7   : > { %1847 = vpow2.f32 %v704_v61  ;;  %v706_v0 = vmul.f32 1.442695, %v701_v62  ;;  %1765 = vmatprep.subr.msk.bf16.mxu1 %vm627_vm1, %v793_v63  ;;  %v803_v10 = vsel %vm627_vm1, %v793_v63, 0 }
 0x3a8   : > { %v795_v11 = vpop.permute.xlu0 %794 }
 0x3a9   : > { %1849 = vpow2.f32 %v706_v0  ;;  %v806_v13 = vsel %vm627_vm1, %v795_v11, 0 }
 0x3aa   : > { %v787_v8 = vpop.permute.xlu1 %786 }
 0x3ac   : > { %v962_v17 = vpop.permute.xlu0 %961 }
 0x3ad   : > { %v973_v18 = vsel %vm627_vm1, %v962_v17, 0 }
 0x3ae   : > { %v960_v12 = vpop.permute.xlu1 %959 }
 0x3af   : > { %v2125_v1 = vpop.eup %1845  ;;  %v970_v15 = vsel %vm627_vm1, %v960_v12, 0 }
 0x3b0   : > { %v958_v19 = vpop.permute.xlu0 %957 }
 0x3b1   : > { %v2127_v4 = vpop.eup %1847 }
 0x3b2   : > { %v717_v6 = vpack.c.bf16 %v2127_v4, %v2125_v1  ;;  %v789_v14 = vpop.permute.xlu1 %788 }
 0x3b3   : > { %v2131_v7 = vpop.eup %1849 }
 0x3b4   : > { %1691 = vmatprep.mubr.msk.bf16.mxu1 %vm688_vm2, %v717_v6  ;;  %v718_v9 = vpack.c.bf16 %v2131_v7, %v2131_v7 }
 0x3b6   : > { %1692 = vmatmul.mubr.msk.bf16.vlgmr.msra.gmra.mrb[4].mxu1 %vm688_vm2, %v718_v9  ;;  %v956_v16 = vpop.permute.xlu1 %955 }
 0x3b7   : > { %1696 = vmatpush3.bf16.xpose.msra.mxu1 %v803_v10  ;;  %1699 = vmatprep.mubr.msk.bf16.mxu1 %vm627_vm1, %v787_v8 }
 0x3b8   : > { %1766 = vmatprep.subr.msk.bf16.mxu1 %vm627_vm1, %v795_v11 }
 0x3bf   : > { %1698 = vmatpush3.bf16.xpose.msra.mxu1 %v806_v13 }
 0x3c0   : > { %1767 = vmatprep.subr.msk.bf16.mxu1 %vm627_vm1, %v960_v12 }
 0x3c6   : > { %1700 = vmatmul.mubr.msk.bf16.vlgmr.msra.gmra.mrb[8].mxu1 %vm627_vm1, %v789_v14 }
 0x3c7   : > { %1712 = vmatpush3.bf16.xpose.msra.mxu1 %v970_v15  ;;  %1715 = vmatprep.mubr.msk.bf16.mxu1 %vm627_vm1, %v956_v16 }
 0x3c8   : > { %1768 = vmatprep.subr.msk.bf16.mxu1 %vm627_vm1, %v962_v17 }
 0x3cf   : > { %1714 = vmatpush3.bf16.xpose.msra.mxu1 %v973_v18 }
 0x3d6   : > { %1716 = vmatmul.mubr.msk.bf16.vlgmr.msra.gmra.mrb[12].mxu1 %vm627_vm1, %v958_v19 }
 0x489   : > { %v2148_v20 = vpop.f32.mrb[4].mxu1 }
 0x48a   : > { %v2150_v21 = vpop.f32.mrb[5].mxu1 }
 0x48b   : > { %v1694_v22 = vpop.f32.mrb[6].mxu1 }
 0x48c   : > { %v2152_v23 = vpop.f32.mrb[7].mxu1 }
 0x499   : > { %v2154_v24 = vpop.f32.mrb[8].mxu1 }
 0x49a   : > { %v2156_v25 = vpop.f32.mrb[9].mxu1  ;;  %v862_v41 = vsel %vm695_vm3, %v2154_v24, -inf }
 0x49b   : > { %v1702_v26 = vpop.f32.mrb[10].mxu1  ;;  %v856_v39 = vsel %vm688_vm2, %v2156_v25, -inf }
 0x49c   : > { %v2158_v27 = vpop.f32.mrb[11].mxu1 }
 0x4a9   : > { %v1717_v28 = vpop.f32.mrb[12].mxu1 }
 0x4aa   : > { %v1009_v29 = vpop.f32.mrb[13].mxu1  ;;  %v1029_v32 = vsel %vm695_vm3, %v1717_v28, -inf }
 0x4ab   : > { %1030 = vmax.xlane.f32.xlu0 %v1029_v32  ;;  %v1718_v33 = vpop.f32.mrb[14].mxu1  ;;  %v1023_v37 = vsel %vm688_vm2, %v1009_v29, -inf }
 0x4ac   : > { %1024 = vmax.xlane.f32.xlu1 %v1023_v37  ;;  %v1012_v38 = vpop.f32.mrb[15].mxu1 }
 0x4ad   : > { %v1026_v40 = vsel %vm688_vm2, %v1012_v38, -inf }
 0x4af   : > { %1027 = vmax.xlane.f32.xlu0 %v1026_v40 }
 0x4bd   : > { %1054 = vrot.lane.b32.xlu1 %v2073_v30, %s1903_s22 }
 0x4c1   : > { %1124 = vrot.lane.b32.xlu1 %v2081_v35, %s1904_s23  ;;  %v859_v35 = vsel %vm688_vm2, %v2158_v27, -inf }
 0x4c5   : > { %1126 = vrot.lane.b32.xlu1 %v2095_v44, %s1904_s23  ;;  %1052 = vrot.lane.b32.xlu0 %v2083_v36, %s1903_s22 }
 0x4c9   : > { %1122 = vrot.lane.b32.xlu1 %v2101_v47, %s1904_s23  ;;  %1120 = vrot.lane.b32.xlu0 %v2075_v31, %s1904_s23 }
 0x4e8   : > { %857 = vmax.xlane.f32.xlu0 %v856_v39 }
 0x4ec   : > { %863 = vmax.xlane.f32.xlu0 %v862_v41 }
 0x4ed   : > { %860 = vmax.xlane.f32.xlu1 %v859_v35 }
 0x538   : > { %v1031_v42 = vpop.xlane.xlu0 %1030 }
 0x539   : > { %v1034_v43 = vsub.f32 %v1717_v28, %v1031_v42  ;;  %v1025_v44 = vpop.xlane.xlu1 %1024 }
 0x53a   : > { %v1032_v45 = vsub.f32 %v1009_v29, %v1025_v44 }
 0x53b   : > { %v1039_v46 = vmul.f32 1.442695, %v1034_v43 }
 0x53c   : > { %v1035_v47 = vmul.f32 1.442695, %v1032_v45  ;;  %v1028_v48 = vpop.xlane.xlu0 %1027 }
 0x53d   : > { %v1033_v31 = vsub.f32 %v1012_v38, %v1028_v48  ;;  %v1055_v49 = vpop.permute.xlu1 %1054  ;;  %1851 = vpow2.f32 %v1039_v46 }
 0x53e   : > { %1853 = vpow2.f32 %v1035_v47  ;;  %v1064_v52 = vand.u32 %v1055_v49, %v2079_v34 }
 0x53f   : > { %v1037_v50 = vmul.f32 1.442695, %v1033_v31 }
 0x540   : > { %v1053_v51 = vpop.permute.xlu0 %1052 }
 0x541   : > { %1855 = vpow2.f32 %v1037_v50  ;;  %1719 = vmatprep.subr.bf16.mxu1 %v1053_v51  ;;  %v1125_v53 = vpop.permute.xlu1 %1124 }
 0x542   : > { %1720 = vmatpush3.bf16.msra.mxu1 %v1053_v51  ;;  %v1135_v59 = vsel %vm627_vm1, %v1125_v53, 0 }
 0x543   : > { %1721 = vmatprep.subr.bf16.mxu1 %v1064_v52 }
 0x544   : > { %v1121_v60 = vpop.permute.xlu0 %1120 }
 0x545   : > { %v1127_v61 = vpop.permute.xlu1 %1126 }
 0x546   : > { %1722 = vmatpush3.bf16.msra.mxu1 %v1064_v52  ;;  %v1138_v62 = vsel %vm627_vm1, %v1127_v61, 0 }
 0x547   : > { %1769 = vmatprep.subr.msk.bf16.mxu1 %vm627_vm1, %v1125_v53  ;;  %v1852_v54 = vpop.eup %1851 }
 0x548   : > { %v1854_v55 = vpop.eup %1853  ;;  %v1051_v58 = vpack.c.bf16 %v1852_v54, %v1852_v54 }
 0x549   : > { %v1123_v63 = vpop.permute.xlu1 %1122 }
 0x54b   : > { %v1856_v56 = vpop.eup %1855 }
 0x54c   : > { %v1050_v57 = vpack.c.bf16 %v1856_v56, %v1854_v55 }
 0x54e   : > { %1723 = vmatprep.mubr.msk.bf16.mxu1 %vm688_vm2, %v1050_v57 }
 0x54f   : > { %1724 = vmatmul.mubr.msk.bf16.vlgmr.msra.gmra.mrb[16].mxu1 %vm688_vm2, %v1051_v58 }
 0x550   : > { %1728 = vmatpush3.bf16.xpose.msra.mxu1 %v1135_v59  ;;  %1731 = vmatprep.mubr.msk.bf16.mxu1 %vm627_vm1, %v1121_v60 }
 0x551   : > { %1770 = vmatprep.subr.msk.bf16.mxu1 %vm627_vm1, %v1127_v61 }
 0x558   : > { %1730 = vmatpush3.bf16.xpose.msra.mxu1 %v1138_v62 }
 0x55f   : > { %1732 = vmatmul.mubr.msk.bf16.vlgmr.msra.gmra.mrb[20].mxu1 %vm627_vm1, %v1123_v63  ;;  %v711_v63 = vsel %vm688_vm2, %v2127_v4, 0.0 }
 0x575   : > { %v858_v0 = vpop.xlane.xlu0 %857 }
 0x576   : > { %v865_v6 = vsub.f32 %v2156_v25, %v858_v0 }
 0x578   : > { %v868_v8 = vmul.f32 1.442695, %v865_v6  ;;  %v714_v6 = vsel %vm695_vm3, %v2131_v7, 0.0  ;;  %v1832_v7 = vld [vmem:[%s2290_s5 + $0x8] sm:$0xff]  }
 0x579   : > { %v864_v32 = vpop.xlane.xlu0 %863 }
 0x57a   : > { %v861_v9 = vpop.xlane.xlu1 %860  ;;  %1857 = vpow2.f32 %v868_v8  ;;  %v867_v33 = vsub.f32 %v2154_v24, %v864_v32  ;;  %v1044_v24 = vsel %vm688_vm2, %v1856_v56, 0.0 }
 0x57b   : > { %v866_v10 = vsub.f32 %v2158_v27, %v861_v9 }
 0x57c   : > { %v872_v37 = vmul.f32 1.442695, %v867_v33 }
 0x57d   : > { %v870_v11 = vmul.f32 1.442695, %v866_v10 }
 0x57f   : > { %1859 = vpow2.f32 %v870_v11 }
 0x580   : > { %1861 = vpow2.f32 %v872_v37 }
 0x584   : > { %v1858_v12 = vpop.eup %1857 }
 0x585   : > { %v874_v38 = vsel %vm688_vm2, %v1858_v12, 0.0 }
 0x589   : > { %v1860_v13 = vpop.eup %1859 }
 0x58a   : > { %v883_v14 = vpack.c.bf16 %v1860_v13, %v1858_v12  ;;  %v1862_v40 = vpop.eup %1861  ;;  %v877_v39 = vsel %vm688_vm2, %v1860_v13, 0.0 }
 0x58b   : > { %v880_v41 = vsel %vm695_vm3, %v1862_v40, 0.0 }
 0x58c   : > { %1707 = vmatprep.mubr.msk.bf16.mxu0 %vm688_vm2, %v883_v14 }
 0x622   : > { %v2193_v15 = vpop.f32.mrb[16].mxu1 }
 0x623   : > { %v2195_v16 = vpop.f32.mrb[17].mxu1 }
 0x624   : > { %v1726_v17 = vpop.f32.mrb[18].mxu1 }
 0x625   : > { %v2197_v18 = vpop.f32.mrb[19].mxu1  ;;  %v1831_v17 = vld [vmem:[%s2290_s5] sm:$0xff]  }
 0x632   : > { %v1733_v19 = vpop.f32.mrb[20].mxu1 }
 0x633   : > { %v1174_v22 = vpop.f32.mrb[21].mxu1  ;;  %v1194_v25 = vsel %vm695_vm3, %v1733_v19, -inf }
 0x634   : > { %1195 = vmax.xlane.f32.xlu1 %v1194_v25  ;;  %v1734_v26 = vpop.f32.mrb[22].mxu1  ;;  %v1188_v27 = vsel %vm688_vm2, %v1174_v22, -inf }
 0x635   : > { %1189 = vmax.xlane.f32.xlu0 %v1188_v27  ;;  %v1177_v28 = vpop.f32.mrb[23].mxu1  ;;  %v1836_v27 = vld [vmem:[%s2290_s5 + $0x28] sm:$0xff]  }
 0x636   : > { %v1191_v29 = vsel %vm688_vm2, %v1177_v28, -inf }
 0x639   : > { %1192 = vmax.xlane.f32.xlu0 %v1191_v29  ;;  %v1837_v29 = vld [vmem:[%s2290_s5 + $0x30] sm:$0xff]  }
 0x645   : > { %889 = vrot.lane.b32.xlu1 %v2073_v30, %s1902_s21 }
 0x649   : > { %1217 = vrot.lane.b32.xlu1 %v2083_v36, %s1904_s23 }
 0x64d   : > { %1219 = vrot.lane.b32.xlu1 %v2073_v30, %s1904_s23  ;;  %v1047_v30 = vsel %vm695_vm3, %v1852_v54, 0.0 }
 0x64f   : > { %887 = vrot.lane.b32.xlu0 %v2083_v36, %s1902_s21  ;;  %v1041_v36 = vsel %vm688_vm2, %v1854_v55, 0.0  ;;  %v884_v55 = vpack.c.bf16 %v1862_v40, %v1862_v40 }
 0x66e   : > { %875 = vadd.xlane.f32.xlu0 %v874_v38 }
 0x671   : > { %878 = vadd.xlane.f32.xlu1 %v877_v39 }
 0x672   : > { %881 = vadd.xlane.f32.xlu0 %v880_v41 }
 0x675   : > { %1048 = vadd.xlane.f32.xlu1 %v1047_v30 }
 0x676   : > { %1042 = vadd.xlane.f32.xlu0 %v1041_v36 }
 0x67a   : > { %1045 = vadd.xlane.f32.xlu0 %v1044_v24 }
 0x6c1   : > { %v1196_v35 = vpop.xlane.xlu1 %1195 }
 0x6c2   : > { %v1199_v42 = vsub.f32 %v1733_v19, %v1196_v35  ;;  %v1190_v43 = vpop.xlane.xlu0 %1189  ;;  %v1833_v19 = vld [vmem:[%s2290_s5 + $0x10] sm:$0xff]  }
 0x6c3   : > { %v1197_v44 = vsub.f32 %v1174_v22, %v1190_v43  ;;  %v1835_v22 = vld [vmem:[%s2290_s5 + $0x20] sm:$0xff]  }
 0x6c4   : > { %v1204_v45 = vmul.f32 1.442695, %v1199_v42  ;;  %v1838_v42 = vld [vmem:[%s2290_s5 + $0x38] sm:$0xff]  }
 0x6c5   : > { %v1200_v46 = vmul.f32 1.442695, %v1197_v44  ;;  %v890_v47 = vpop.permute.xlu1 %889 }
 0x6c6   : > { %v1193_v48 = vpop.xlane.xlu0 %1192  ;;  %v899_v52 = vand.u32 %v890_v47, %v2079_v34 }
 0x6c7   : > { %1863 = vpow2.f32 %v1200_v46  ;;  %v1198_v31 = vsub.f32 %v1177_v28, %v1193_v48 }
 0x6c8   : > { %1865 = vpow2.f32 %v1204_v45 }
 0x6c9   : > { %v1202_v49 = vmul.f32 1.442695, %v1198_v31  ;;  %v1218_v50 = vpop.permute.xlu1 %1217 }
 0x6ca   : > { %v888_v51 = vpop.permute.xlu0 %887 }
 0x6cb   : > { %1867 = vpow2.f32 %v1202_v49  ;;  %1703 = vmatprep.subr.bf16.mxu0 %v888_v51 }
 0x6cc   : > { %1704 = vmatpush3.bf16.msra.mxu0 %v888_v51 }
 0x6cd   : > { %1705 = vmatprep.subr.bf16.mxu0 %v899_v52  ;;  %v1220_v53 = vpop.permute.xlu1 %1219 }
 0x6ce   : > { %v1229_v58 = vand.u32 %v1220_v53, %v2079_v34  ;;  %v708_v34 = vsel %vm688_vm2, %v2125_v1, 0.0 }
 0x6d0   : > { %1706 = vmatpush3.bf16.msra.mxu0 %v899_v52 }
 0x6d1   : > { %v1864_v54 = vpop.eup %1863  ;;  %1735 = vmatprep.subr.bf16.mxu0 %v1218_v50 }
 0x6d2   : > { %v1206_v56 = vsel %vm688_vm2, %v1864_v54, 0.0  ;;  %v1866_v57 = vpop.eup %1865 }
 0x6d3   : > { %1207 = vadd.xlane.f32.xlu0 %v1206_v56  ;;  %1708 = vmatmul.mubr.msk.bf16.vlgmr.msra.gmra.mrb[12].mxu0 %vm688_vm2, %v884_v55  ;;  %v1212_v60 = vsel %vm695_vm3, %v1866_v57, 0.0  ;;  %v1216_v0 = vpack.c.bf16 %v1866_v57, %v1866_v57 }
 0x6d4   : > { %1736 = vmatpush3.bf16.msra.mxu0 %v1218_v50 }
 0x6d5   : > { %v1868_v59 = vpop.eup %1867  ;;  %1737 = vmatprep.subr.bf16.mxu0 %v1229_v58 }
 0x6d6   : > { %v1209_v61 = vsel %vm688_vm2, %v1868_v59, 0.0  ;;  %v1215_v62 = vpack.c.bf16 %v1868_v59, %v1864_v54 }
 0x6d7   : > { %1213 = vadd.xlane.f32.xlu0 %v1212_v60  ;;  %1210 = vadd.xlane.f32.xlu1 %v1209_v61 }
 0x6d8   : > { %1738 = vmatpush3.bf16.msra.mxu0 %v1229_v58  ;;  %1739 = vmatprep.mubr.msk.bf16.mxu0 %vm688_vm2, %v1215_v62 }
 0x6d9   : > { %1743 = vmatprep.subr.bf16.mxu0 %v1831_v17 }
 0x6db   : > { %712 = vadd.xlane.f32.xlu0 %v711_v63  ;;  %709 = vadd.xlane.f32.xlu1 %v708_v34 }
 0x6dc   : > { %1740 = vmatmul.mubr.msk.bf16.vlgmr.msra.gmra.mrb[16].mxu0 %vm688_vm2, %v1216_v0 }
 0x6dd   : > { %1744 = vmatpush3.bf16.msra.mxu0 %v1831_v17 }
 0x6de   : > { %1745 = vmatprep.subr.bf16.mxu0 %v1832_v7 }
 0x6df   : > { %715 = vadd.xlane.f32.xlu1 %v714_v6 }
 0x6e1   : > { %1746 = vmatpush3.bf16.msra.mxu0 %v1832_v7 }
 0x6e2   : > { %1747 = vmatprep.subr.bf16.mxu0 %v1833_v19 }
 0x6e5   : > { %1748 = vmatpush3.bf16.msra.mxu0 %v1833_v19 }
 0x6fb   : > { %v876_v8 = vpop.xlane.xlu0 %875 }
 0x6ff   : > { %v882_v9 = vpop.xlane.xlu0 %881 }
 0x703   : > { %v1043_v10 = vpop.xlane.xlu0 %1042 }
 0x704   : > { %1869 = vrcp.f32 %v1043_v10 }
 0x707   : > { %v1046_v11 = vpop.xlane.xlu0 %1045 }
 0x708   : > { %1871 = vrcp.f32 %v1046_v11 }
 0x709   : > { %1873 = vrcp.f32 %v882_v9 }
 0x70a   : > { %1875 = vrcp.f32 %v876_v8 }
 0x70e   : > { %v1870_v12 = vpop.eup %1869 }
 0x70f   : > { %v1117_v13 = vmul.f32 %v1870_v12, %v2195_v16  ;;  %v1834_v16 = vld [vmem:[%s2290_s5 + $0x18] sm:$0xff]  }
 0x710   : > { %1749 = vmatprep.subr.bf16.mxu0 %v1834_v16 }
 0x711   : > { %1750 = vmatpush3.bf16.msra.mxu0 %v1834_v16 }
 0x712   : > { %v1872_v4 = vpop.eup %1871  ;;  %1751 = vmatprep.subr.bf16.mxu0 %v1835_v22 }
 0x713   : > { %v1118_v1 = vmul.f32 %v1872_v4, %v2197_v18  ;;  %v879_v18 = vpop.xlane.xlu1 %878  ;;  %v1874_v33 = vpop.eup %1873 }
 0x714   : > { %1877 = vrcp.f32 %v879_v18  ;;  %v1876_v39 = vpop.eup %1875 }
 0x715   : > { %v1789_v14 = vpack.i.bf16 %v1118_v1, %v1117_v13  ;;  %1752 = vmatpush3.bf16.msra.mxu0 %v1835_v22 }
 0x716   : > { %1753 = vmatprep.subr.bf16.mxu0 %v1836_v27 }
 0x717   : > { %v1049_v25 = vpop.xlane.xlu1 %1048 }
 0x718   : > { %1879 = vrcp.f32 %v1049_v25 }
 0x719   : > { %1754 = vmatpush3.bf16.msra.mxu0 %v1836_v27  ;;  %v1581_v27 = vld [vmem:[%s2291_s6] ss:$0 sm:$0xff] }
 0x71a   : > { %1755 = vmatprep.subr.bf16.mxu0 %v1837_v29 }
 0x71d   : > { %1756 = vmatpush3.bf16.msra.mxu0 %v1837_v29 }
 0x71e   : > { %v1878_v30 = vpop.eup %1877  ;;  %1757 = vmatprep.subr.bf16.mxu0 %v1838_v42 }
 0x721   : > { %1758 = vmatpush3.bf16.msra.mxu0 %v1838_v42 }
 0x722   : > { %v1880_v43 = vpop.eup %1879 }
 0x723   : > { %v1119_v46 = vmul.f32 %v1880_v43, %v2193_v15 }
 0x760   : > { %v1208_v26 = vpop.xlane.xlu0 %1207 }
 0x761   : > { %1881 = vrcp.f32 %v1208_v26 }
 0x764   : > { %v1211_v28 = vpop.xlane.xlu1 %1210  ;;  %v1214_v32 = vpop.xlane.xlu0 %1213 }
 0x765   : > { %1883 = vrcp.f32 %v1211_v28 }
 0x766   : > { %1885 = vrcp.f32 %v1214_v32 }
 0x768   : > { %v710_v56 = vpop.xlane.xlu1 %709  ;;  %v713_v57 = vpop.xlane.xlu0 %712 }
 0x769   : > { %1887 = vrcp.f32 %v710_v56 }
 0x76a   : > { %1889 = vrcp.f32 %v713_v57 }
 0x76b   : > { %v1882_v47 = vpop.eup %1881 }
 0x76c   : > { %v716_v58 = vpop.xlane.xlu1 %715 }
 0x76d   : > { %1891 = vrcp.f32 %v716_v58 }
 0x76f   : > { %v1884_v31 = vpop.eup %1883 }
 0x770   : > { %v1886_v50 = vpop.eup %1885 }
 0x773   : > { %v1888_v61 = vpop.eup %1887 }
 0x774   : > { %v1890_v62 = vpop.eup %1889  ;;  %v781_v8 = vmul.f32 %v1888_v61, %v2150_v21 }
 0x775   : > { %v782_v9 = vmul.f32 %v1890_v62, %v2152_v23 }
 0x777   : > { %v1892_v34 = vpop.eup %1891 }
 0x778   : > { %v783_v10 = vmul.f32 %v1892_v34, %v2148_v20 }
 0x7a6   : > { %v1709_v37 = vpop.f32.mrb[12].mxu0 }
 0x7a7   : > { %v954_v38 = vmul.f32 %v1874_v33, %v1709_v37  ;;  %v935_v40 = vpop.f32.mrb[13].mxu0 }
 0x7a8   : > { %v1710_v41 = vpop.f32.mrb[14].mxu0  ;;  %v952_v24 = vmul.f32 %v1876_v39, %v935_v40  ;;  %v1474_v39 = vld [vmem:[%s278_s27 + $0x8] sm:$0x1] }
 0x7a9   : > { %v938_v36 = vpop.f32.mrb[15].mxu0  ;;  %1292 = vrot.lane.b32.xlu1 %v954_v38, %s1904_s23 }
 0x7aa   : > { %v953_v35 = vmul.f32 %v1878_v30, %v938_v36 }
 0x7ac   : > { %v1784_v44 = vpack.i.bf16 %v953_v35, %v952_v24 }
 0x7ad   : > { %1790 = vrot.lane.b32.xlu1 %v1789_v14, %s1903_s22 }
 0x7ae   : > { %1785 = vrot.lane.b32.xlu0 %v1784_v44, %s1904_s23 }
 0x7af   : > { %v1741_v45 = vpop.f32.mrb[16].mxu0 }
 0x7b0   : > { %v1265_v48 = vpop.f32.mrb[17].mxu0  ;;  %v1284_v52 = vmul.f32 %v1886_v50, %v1741_v45 }
 0x7b1   : > { %v1742_v49 = vpop.f32.mrb[18].mxu0  ;;  %1304 = vrot.lane.b32.xlu1 %v1119_v46, %s1903_s22  ;;  %v1282_v53 = vmul.f32 %v1882_v47, %v1265_v48 }
 0x7b2   : > { %v1268_v51 = vpop.f32.mrb[19].mxu0 }
 0x7b3   : > { %v1283_v54 = vmul.f32 %v1884_v31, %v1268_v51 }
 0x7b5   : > { %v1794_v55 = vpack.i.bf16 %v1283_v54, %v1282_v53  ;;  %1316 = vrot.lane.b32.xlu1 %v1284_v52, %s1902_s21 }
 0x7b7   : > { %1795 = vrot.lane.b32.xlu0 %v1794_v55, %s1902_s21 }
 0x81b   : > { %v1293_v15 = vpop.permute.xlu1 %1292 }
 0x81c   : > { %v1323_v13 = vsel %vm627_vm1, %v783_v10, %v1293_v15 }
 0x81f   : > { %v1791_v59 = vpop.permute.xlu1 %1790 }
 0x820   : > { %v1786_v60 = vpop.permute.xlu0 %1785  ;;  %v1793_v1 = vunpack.i.h.bf16 %v1791_v59  ;;  %v1792_v14 = vunpack.i.l.bf16 %v1791_v59 }
 0x821   : > { %v1788_v0 = vunpack.i.h.bf16 %v1786_v60  ;;  %v1787_v6 = vunpack.i.l.bf16 %v1786_v60 }
 0x823   : > { %v1305_v63 = vpop.permute.xlu1 %1304  ;;  %v1322_v11 = vsel %vm627_vm1, %v782_v9, %v1788_v0  ;;  %v1321_v12 = vsel %vm627_vm1, %v781_v8, %v1787_v6 }
 0x824   : > { %v1327_v7 = vsel %vm1324_vm4, %v1323_v13, %v1305_v63  ;;  %v1325_v16 = vsel %vm1324_vm4, %v1321_v12, %v1792_v14  ;;  %v1326_v23 = vsel %vm1324_vm4, %v1322_v11, %v1793_v1 }
 0x827   : > { %v1317_v4 = vpop.permute.xlu1 %1316 }
 0x828   : > { %v1331_v18 = vsel %vm1328_vm5, %v1327_v7, %v1317_v4 }
 0x829   : > { %v1796_v17 = vpop.permute.xlu0 %1795  ;;  %v1333_v26 = vpack.c.bf16 %v1331_v18, %v1331_v18 }
 0x82a   : > { %v1798_v19 = vunpack.i.h.bf16 %v1796_v17  ;;  %v1797_v21 = vunpack.i.l.bf16 %v1796_v17 }
 0x82c   : > { %v1329_v20 = vsel %vm1328_vm5, %v1325_v16, %v1797_v21  ;;  %v1330_v22 = vsel %vm1328_vm5, %v1326_v23, %v1798_v19 }
 0x82d   : > { %v1332_v25 = vpack.c.bf16 %v1330_v22, %v1329_v20 }
 0x82f   : > { %1759 = vmatprep.mubr.bf16.mxu0 %v1332_v25 }
 0x830   : > { %1760 = vmatmul.mubr.bf16.vlgmr.msra.gmra.mrb[20].mxu0 %v1333_v26 }
 0x903   : > { %v1761_v28 = vpop.f32.mrb[20].mxu0 }
 0x904   : > { %v1448_v29 = vadd.f32 %v1761_v28, %v1581_v27  ;;  %v1439_v32 = vpop.f32.mrb[21].mxu0 }
 0x905   : > { %v1440_v33 = vadd.f32 %v1581_v27, %v1439_v32  ;;  %v1762_v37 = vpop.f32.mrb[22].mxu0 }
 0x906   : > { %v1455_v38 = vadd.f32 %v1448_v29, %v1963_v3  ;;  %v1442_v40 = vpop.f32.mrb[23].mxu0 }
 0x907   : > { %v1443_v41 = vadd.f32 %v1581_v27, %v1442_v40  ;;  %v1453_v36 = vadd.f32 %v1961_v2, %v1440_v33 }
 0x908   : > { %v1597_v30 = vpack.c.bf16 %v1455_v38, %v1455_v38 }
 0x909   : > { %v1454_v24 = vadd.f32 %v1968_v5, %v1443_v41 }
 0x90a   : > { %v1475_v35 = vsel %vm1473_vm7, %v1597_v30, %v1474_v39 }
 0x90b   : > { %1476 = vst [vmem:[%s278_s27 + $0x8] sm:$0x1] %v1475_v35  ;;  %v1605_v42 = vpack.c.bf16 %v1454_v24, %v1453_v36 }
 0x90d   : > { %1606 = vst [vmem:[%s278_s27] sm:$0xff] %v1605_v42  }
 0x90e PF: > { %s17_s24 = sadd.s32 1, %s1899_s24  }
 0x90f   : > { %p14_p4 = scmp.ge.s32.totalorder %s17_s24, 4  }
 0x911   :  { %16 = sbr.rel (!%p14_p4) target bundleno = 1 (0x1), region = 78 }

</bundles_post_ra>
